<compile_context>
chip_gen: v7x
topology: tpu7x:2x2x1
jax: 0.10.0
libtpu: 0.0.40
codegen_flags: <defaults>
</compile_context>

<pallas_src>
import jax
import jax.numpy as jnp
from jax.experimental import pallas as pl
from jax.experimental.pallas import tpu as pltpu

INPUT_SIZE = 256
LAYER_SIZES = (INPUT_SIZE, 128, 64, 32, 64, 128, INPUT_SIZE)
ACTS = ("relu", "relu", None, "relu", "relu", "tanh")


def autoencoder_kernel(x_ref,
                       w1, b1, w2, b2, w3, b3,    # encoder
                       w4, b4, w5, b5, w6, b6,    # decoder
                       out_ref):
    def dense(h_bf16, w_ref, b_ref, act):
        # bf16 operands on the MXU, f32 accumulation.
        y = jnp.dot(h_bf16, w_ref[...], preferred_element_type=jnp.float32)
        y = y + b_ref[...]                       # (1, out) f32 bias broadcast
        if act == "relu":
            y = jnp.maximum(y, 0.0)
        elif act == "tanh":
            y = jnp.tanh(y)                      # EUP
        return y

    h = x_ref[...]
    if h.dtype != jnp.bfloat16:                  # no-op when x is already bf16
        h = h.astype(jnp.bfloat16)
    # ---- encoder ----
    h = dense(h, w1, b1, "relu").astype(jnp.bfloat16)
    h = dense(h, w2, b2, "relu").astype(jnp.bfloat16)
    h = dense(h, w3, b3, None).astype(jnp.bfloat16)
    # ---- decoder ----
    h = dense(h, w4, b4, "relu").astype(jnp.bfloat16)
    h = dense(h, w5, b5, "relu").astype(jnp.bfloat16)
    h = dense(h, w6, b6, "tanh")
    out_ref[...] = h.astype(out_ref.dtype)


def _round_up(n, m):
    return ((n + m - 1) // m) * m


def _pick_batch_tile(b):
    """HBM-bound kernel => largest batch tile that still leaves >= 2 grid steps
    (so both v7x TensorCores get work), capped at 512 (1024 for very large B).
    VMEM at TM=1024 is only a few MiB, well under every generation's limit."""
    b8 = _round_up(max(b, 8), 8)
    if b8 <= 128:
        return b8                               # single small tile
    cap = 1024 if b8 >= 2048 else 512
    half = _round_up(pl.cdiv(b8, 2), 8)         # keep nb >= 2
    return max(128, min(cap, half))


def autoencoder_forward(x, params, out_dtype=jnp.float32):
    """x: [B, INPUT_SIZE] float (bf16 preferred). params: list of
    (W (in,out) bf16, b (1,out) f32). Returns [B, INPUT_SIZE] out_dtype."""
    B, F = x.shape
    assert F == INPUT_SIZE

    tm = _pick_batch_tile(B)
    nb = pl.cdiv(B, tm)      # ragged last tile is masked by Pallas (no pad/slice)

    flat_inputs = [x]
    in_specs = [pl.BlockSpec((tm, F), lambda i: (i, 0))]
    for (w, b) in params:
        flat_inputs += [w, b]
        # Constant index_map -> weights/biases stay VMEM-resident across steps.
        in_specs.append(pl.BlockSpec(w.shape, lambda i: (0, 0)))
        in_specs.append(pl.BlockSpec(b.shape, lambda i: (0, 0)))

    flops = 2 * B * sum(LAYER_SIZES[i] * LAYER_SIZES[i + 1]
                        for i in range(len(LAYER_SIZES) - 1))
    weight_bytes = sum(int(w.size) * w.dtype.itemsize + int(b.size) * b.dtype.itemsize
                       for (w, b) in params)
    bytes_accessed = (B * F * x.dtype.itemsize
                      + B * F * jnp.dtype(out_dtype).itemsize
                      + weight_bytes)

    return pl.pallas_call(
        autoencoder_kernel,
        out_shape=jax.ShapeDtypeStruct((B, F), out_dtype),
        grid_spec=pltpu.PrefetchScalarGridSpec(
            num_scalar_prefetch=0,
            grid=(nb,),
            in_specs=in_specs,
            out_specs=pl.BlockSpec((tm, F), lambda i: (i, 0)),
        ),
        compiler_params=pltpu.CompilerParams(
            dimension_semantics=("parallel",),
        ),
        cost_estimate=pl.CostEstimate(
            flops=flops,
            transcendentals=B * F,
            bytes_accessed=bytes_accessed,
        ),
    )(*flat_inputs)


def init_params(key, input_size):
    """PyTorch-Linear-equivalent init; weight pre-transposed to (in, out), bf16."""
    sizes = [input_size, 128, 64, 32, 64, 128, input_size]
    params = []
    for i in range(len(sizes) - 1):
        fan_in, fan_out = sizes[i], sizes[i + 1]
        key, kw, kb = jax.random.split(key, 3)
        bound = 1.0 / jnp.sqrt(jnp.float32(fan_in))
        w = jax.random.uniform(kw, (fan_in, fan_out), jnp.float32, -bound, bound)
        b = jax.random.uniform(kb, (1, fan_out), jnp.float32, -bound, bound)
        params.append((w.astype(jnp.bfloat16), b))
    return params


def reference_forward(x, params):
    """Pure-JAX reference at matching precision (bf16 operands, f32 accumulate)."""
    h = x
    for (w, b), act in zip(params, ACTS):
        h = jnp.dot(h.astype(jnp.bfloat16), w,
                    preferred_element_type=jnp.float32) + b
        if act == "relu":
            h = jnp.maximum(h, 0.0)
        elif act == "tanh":
            h = jnp.tanh(h)
    return h


if __name__ == "__main__":
    key = jax.random.PRNGKey(0)
    k1, k2, k3, kp = jax.random.split(key, 4)
    params = init_params(kp, INPUT_SIZE)

    def run_case(k, batch):
        # Producer emits bf16 activations (first matmul truncates to bf16 anyway).
        x = jax.random.normal(k, (batch, INPUT_SIZE), jnp.float32).astype(jnp.bfloat16)
        out = jax.block_until_ready(autoencoder_forward(x, params))
        ref = reference_forward(x, params)
        assert out.shape == (batch, INPUT_SIZE)
        assert out.dtype == jnp.float32
        assert jnp.allclose(out, ref, atol=1e-2, rtol=1e-2)

    run_case(k1, 512)   # TM=256, 2 parallel grid steps, exact tiling
    run_case(k2, 200)   # TM=128, 2 steps, ragged last tile (masked, no pad/slice)
    run_case(k3, 48)    # single small tile (B <= 128 path)

    print("KERNEL_OK")
</pallas_src>

<mosaic_0001>
module attributes {stable_mosaic.version = 11 : i64} {
  func.func @autoencoder_kernel(%arg0: i32, %arg1: memref<256x256xbf16, #tpu.memory_space<vmem>>, %arg2: memref<256x128xbf16, #tpu.memory_space<vmem>>, %arg3: memref<1x128xf32, #tpu.memory_space<vmem>>, %arg4: memref<128x64xbf16, #tpu.memory_space<vmem>>, %arg5: memref<1x64xf32, #tpu.memory_space<vmem>>, %arg6: memref<64x32xbf16, #tpu.memory_space<vmem>>, %arg7: memref<1x32xf32, #tpu.memory_space<vmem>>, %arg8: memref<32x64xbf16, #tpu.memory_space<vmem>>, %arg9: memref<1x64xf32, #tpu.memory_space<vmem>>, %arg10: memref<64x128xbf16, #tpu.memory_space<vmem>>, %arg11: memref<1x128xf32, #tpu.memory_space<vmem>>, %arg12: memref<128x256xbf16, #tpu.memory_space<vmem>>, %arg13: memref<1x256xf32, #tpu.memory_space<vmem>>, %arg14: memref<256x256xf32, #tpu.memory_space<vmem>>) attributes {dimension_semantics = [#tpu.dimension_semantics<parallel>], iteration_bounds = array<i64: 2>, scalar_prefetch = 0 : i64, scratch_operands = 0 : i64, tpu.core_type = #tpu.core_type<tc>, window_params = [{transform_indices = @transform_0, window_bounds = array<i64: 256, 256>}, {pipeline_mode = #tpu.pipeline_mode<synchronous>, transform_indices = @transform_1, window_bounds = array<i64: 256, 128>}, {pipeline_mode = #tpu.pipeline_mode<synchronous>, transform_indices = @transform_2, window_bounds = array<i64: 1, 128>}, {pipeline_mode = #tpu.pipeline_mode<synchronous>, transform_indices = @transform_3, window_bounds = array<i64: 128, 64>}, {pipeline_mode = #tpu.pipeline_mode<synchronous>, transform_indices = @transform_4, window_bounds = array<i64: 1, 64>}, {pipeline_mode = #tpu.pipeline_mode<synchronous>, transform_indices = @transform_5, window_bounds = array<i64: 64, 32>}, {pipeline_mode = #tpu.pipeline_mode<synchronous>, transform_indices = @transform_6, window_bounds = array<i64: 1, 32>}, {pipeline_mode = #tpu.pipeline_mode<synchronous>, transform_indices = @transform_7, window_bounds = array<i64: 32, 64>}, {pipeline_mode = #tpu.pipeline_mode<synchronous>, transform_indices = @transform_8, window_bounds = array<i64: 1, 64>}, {pipeline_mode = #tpu.pipeline_mode<synchronous>, transform_indices = @transform_9, window_bounds = array<i64: 64, 128>}, {pipeline_mode = #tpu.pipeline_mode<synchronous>, transform_indices = @transform_10, window_bounds = array<i64: 1, 128>}, {pipeline_mode = #tpu.pipeline_mode<synchronous>, transform_indices = @transform_11, window_bounds = array<i64: 128, 256>}, {pipeline_mode = #tpu.pipeline_mode<synchronous>, transform_indices = @transform_12, window_bounds = array<i64: 1, 256>}, {transform_indices = @transform_13, window_bounds = array<i64: 256, 256>}]} {
    %c0 = arith.constant 0 : index
    %c0_0 = arith.constant 0 : index
    %0 = vector.load %arg1[%c0, %c0_0] : memref<256x256xbf16, #tpu.memory_space<vmem>>, vector<256x256xbf16>
    %c0_1 = arith.constant 0 : index
    %c0_2 = arith.constant 0 : index
    %1 = vector.load %arg2[%c0_1, %c0_2] : memref<256x128xbf16, #tpu.memory_space<vmem>>, vector<256x128xbf16>
    %cst = arith.constant dense<0.000000e+00> : vector<256x128xf32>
    %2 = tpu.matmul %0, %1, %cst {dimension_numbers = #tpu.dot_dimension_numbers<[1], [0], [0], [1], [0, 0, 1, 1], [], []>} : vector<256x256xbf16>, vector<256x128xbf16>, vector<256x128xf32> -> vector<256x128xf32>
    %c0_3 = arith.constant 0 : index
    %c0_4 = arith.constant 0 : index
    %3 = vector.load %arg3[%c0_3, %c0_4] : memref<1x128xf32, #tpu.memory_space<vmem>>, vector<1x128xf32>
    %4 = vector.broadcast %3 : vector<1x128xf32> to vector<256x128xf32>
    %5 = arith.addf %2, %4 : vector<256x128xf32>
    %cst_5 = arith.constant 0.000000e+00 : f32
    %6 = vector.broadcast %cst_5 : f32 to vector<256x128xf32>
    %7 = arith.maximumf %5, %6 : vector<256x128xf32>
    %8 = arith.truncf %7 : vector<256x128xf32> to vector<256x128xbf16>
    %c0_6 = arith.constant 0 : index
    %c0_7 = arith.constant 0 : index
    %9 = vector.load %arg4[%c0_6, %c0_7] : memref<128x64xbf16, #tpu.memory_space<vmem>>, vector<128x64xbf16>
    %cst_8 = arith.constant dense<0.000000e+00> : vector<256x64xf32>
    %10 = tpu.matmul %8, %9, %cst_8 {dimension_numbers = #tpu.dot_dimension_numbers<[1], [0], [0], [1], [0, 0, 1, 1], [], []>} : vector<256x128xbf16>, vector<128x64xbf16>, vector<256x64xf32> -> vector<256x64xf32>
    %c0_9 = arith.constant 0 : index
    %c0_10 = arith.constant 0 : index
    %11 = vector.load %arg5[%c0_9, %c0_10] : memref<1x64xf32, #tpu.memory_space<vmem>>, vector<1x64xf32>
    %12 = vector.broadcast %11 : vector<1x64xf32> to vector<256x64xf32>
    %13 = arith.addf %10, %12 : vector<256x64xf32>
    %cst_11 = arith.constant 0.000000e+00 : f32
    %14 = vector.broadcast %cst_11 : f32 to vector<256x64xf32>
    %15 = arith.maximumf %13, %14 : vector<256x64xf32>
    %16 = arith.truncf %15 : vector<256x64xf32> to vector<256x64xbf16>
    %c0_12 = arith.constant 0 : index
    %c0_13 = arith.constant 0 : index
    %17 = vector.load %arg6[%c0_12, %c0_13] : memref<64x32xbf16, #tpu.memory_space<vmem>>, vector<64x32xbf16>
    %cst_14 = arith.constant dense<0.000000e+00> : vector<256x32xf32>
    %18 = tpu.matmul %16, %17, %cst_14 {dimension_numbers = #tpu.dot_dimension_numbers<[1], [0], [0], [1], [0, 0, 1, 1], [], []>} : vector<256x64xbf16>, vector<64x32xbf16>, vector<256x32xf32> -> vector<256x32xf32>
    %c0_15 = arith.constant 0 : index
    %c0_16 = arith.constant 0 : index
    %19 = vector.load %arg7[%c0_15, %c0_16] : memref<1x32xf32, #tpu.memory_space<vmem>>, vector<1x32xf32>
    %20 = vector.broadcast %19 : vector<1x32xf32> to vector<256x32xf32>
    %21 = arith.addf %18, %20 : vector<256x32xf32>
    %22 = arith.truncf %21 : vector<256x32xf32> to vector<256x32xbf16>
    %c0_17 = arith.constant 0 : index
    %c0_18 = arith.constant 0 : index
    %23 = vector.load %arg8[%c0_17, %c0_18] : memref<32x64xbf16, #tpu.memory_space<vmem>>, vector<32x64xbf16>
    %cst_19 = arith.constant dense<0.000000e+00> : vector<256x64xf32>
    %24 = tpu.matmul %22, %23, %cst_19 {dimension_numbers = #tpu.dot_dimension_numbers<[1], [0], [0], [1], [0, 0, 1, 1], [], []>} : vector<256x32xbf16>, vector<32x64xbf16>, vector<256x64xf32> -> vector<256x64xf32>
    %c0_20 = arith.constant 0 : index
    %c0_21 = arith.constant 0 : index
    %25 = vector.load %arg9[%c0_20, %c0_21] : memref<1x64xf32, #tpu.memory_space<vmem>>, vector<1x64xf32>
    %26 = vector.broadcast %25 : vector<1x64xf32> to vector<256x64xf32>
    %27 = arith.addf %24, %26 : vector<256x64xf32>
    %cst_22 = arith.constant 0.000000e+00 : f32
    %28 = vector.broadcast %cst_22 : f32 to vector<256x64xf32>
    %29 = arith.maximumf %27, %28 : vector<256x64xf32>
    %30 = arith.truncf %29 : vector<256x64xf32> to vector<256x64xbf16>
    %c0_23 = arith.constant 0 : index
    %c0_24 = arith.constant 0 : index
    %31 = vector.load %arg10[%c0_23, %c0_24] : memref<64x128xbf16, #tpu.memory_space<vmem>>, vector<64x128xbf16>
    %cst_25 = arith.constant dense<0.000000e+00> : vector<256x128xf32>
    %32 = tpu.matmul %30, %31, %cst_25 {dimension_numbers = #tpu.dot_dimension_numbers<[1], [0], [0], [1], [0, 0, 1, 1], [], []>} : vector<256x64xbf16>, vector<64x128xbf16>, vector<256x128xf32> -> vector<256x128xf32>
    %c0_26 = arith.constant 0 : index
    %c0_27 = arith.constant 0 : index
    %33 = vector.load %arg11[%c0_26, %c0_27] : memref<1x128xf32, #tpu.memory_space<vmem>>, vector<1x128xf32>
    %34 = vector.broadcast %33 : vector<1x128xf32> to vector<256x128xf32>
    %35 = arith.addf %32, %34 : vector<256x128xf32>
    %cst_28 = arith.constant 0.000000e+00 : f32
    %36 = vector.broadcast %cst_28 : f32 to vector<256x128xf32>
    %37 = arith.maximumf %35, %36 : vector<256x128xf32>
    %38 = arith.truncf %37 : vector<256x128xf32> to vector<256x128xbf16>
    %c0_29 = arith.constant 0 : index
    %c0_30 = arith.constant 0 : index
    %39 = vector.load %arg12[%c0_29, %c0_30] : memref<128x256xbf16, #tpu.memory_space<vmem>>, vector<128x256xbf16>
    %cst_31 = arith.constant dense<0.000000e+00> : vector<256x256xf32>
    %40 = tpu.matmul %38, %39, %cst_31 {dimension_numbers = #tpu.dot_dimension_numbers<[1], [0], [0], [1], [0, 0, 1, 1], [], []>} : vector<256x128xbf16>, vector<128x256xbf16>, vector<256x256xf32> -> vector<256x256xf32>
    %c0_32 = arith.constant 0 : index
    %c0_33 = arith.constant 0 : index
    %41 = vector.load %arg13[%c0_32, %c0_33] : memref<1x256xf32, #tpu.memory_space<vmem>>, vector<1x256xf32>
    %42 = vector.broadcast %41 : vector<1x256xf32> to vector<256x256xf32>
    %43 = arith.addf %40, %42 : vector<256x256xf32>
    %44 = math.tanh %43 : vector<256x256xf32>
    %c0_34 = arith.constant 0 : index
    %c0_35 = arith.constant 0 : index
    %45 = vector.load %arg14[%c0_34, %c0_35] : memref<256x256xf32, #tpu.memory_space<vmem>>, vector<256x256xf32>
    tpu.vector_store %arg14[%c0_34, %c0_35], %44 {strides = array<i32>} : memref<256x256xf32, #tpu.memory_space<vmem>>, vector<256x256xf32>,
    return
  }
  func.func @transform_0(%arg0: i32) -> (i32, i32) {
    %c0_i32 = arith.constant 0 : i32
    %c0_i32_0 = arith.constant 0 : i32
    return %arg0, %c0_i32 : i32, i32
  }
  func.func @transform_1(%arg0: i32) -> (i32, i32) {
    %c0_i32 = arith.constant 0 : i32
    %c0_i32_0 = arith.constant 0 : i32
    %c0_i32_1 = arith.constant 0 : i32
    return %c0_i32, %c0_i32_0 : i32, i32
  }
  func.func @transform_2(%arg0: i32) -> (i32, i32) {
    %c0_i32 = arith.constant 0 : i32
    %c0_i32_0 = arith.constant 0 : i32
    %c0_i32_1 = arith.constant 0 : i32
    return %c0_i32, %c0_i32_0 : i32, i32
  }
  func.func @transform_3(%arg0: i32) -> (i32, i32) {
    %c0_i32 = arith.constant 0 : i32
    %c0_i32_0 = arith.constant 0 : i32
    %c0_i32_1 = arith.constant 0 : i32
    return %c0_i32, %c0_i32_0 : i32, i32
  }
  func.func @transform_4(%arg0: i32) -> (i32, i32) {
    %c0_i32 = arith.constant 0 : i32
    %c0_i32_0 = arith.constant 0 : i32
    %c0_i32_1 = arith.constant 0 : i32
    return %c0_i32, %c0_i32_0 : i32, i32
  }
  func.func @transform_5(%arg0: i32) -> (i32, i32) {
    %c0_i32 = arith.constant 0 : i32
    %c0_i32_0 = arith.constant 0 : i32
    %c0_i32_1 = arith.constant 0 : i32
    return %c0_i32, %c0_i32_0 : i32, i32
  }
  func.func @transform_6(%arg0: i32) -> (i32, i32) {
    %c0_i32 = arith.constant 0 : i32
    %c0_i32_0 = arith.constant 0 : i32
    %c0_i32_1 = arith.constant 0 : i32
    return %c0_i32, %c0_i32_0 : i32, i32
  }
  func.func @transform_7(%arg0: i32) -> (i32, i32) {
    %c0_i32 = arith.constant 0 : i32
    %c0_i32_0 = arith.constant 0 : i32
    %c0_i32_1 = arith.constant 0 : i32
    return %c0_i32, %c0_i32_0 : i32, i32
  }
  func.func @transform_8(%arg0: i32) -> (i32, i32) {
    %c0_i32 = arith.constant 0 : i32
    %c0_i32_0 = arith.constant 0 : i32
    %c0_i32_1 = arith.constant 0 : i32
    return %c0_i32, %c0_i32_0 : i32, i32
  }
  func.func @transform_9(%arg0: i32) -> (i32, i32) {
    %c0_i32 = arith.constant 0 : i32
    %c0_i32_0 = arith.constant 0 : i32
    %c0_i32_1 = arith.constant 0 : i32
    return %c0_i32, %c0_i32_0 : i32, i32
  }
  func.func @transform_10(%arg0: i32) -> (i32, i32) {
    %c0_i32 = arith.constant 0 : i32
    %c0_i32_0 = arith.constant 0 : i32
    %c0_i32_1 = arith.constant 0 : i32
    return %c0_i32, %c0_i32_0 : i32, i32
  }
  func.func @transform_11(%arg0: i32) -> (i32, i32) {
    %c0_i32 = arith.constant 0 : i32
    %c0_i32_0 = arith.constant 0 : i32
    %c0_i32_1 = arith.constant 0 : i32
    return %c0_i32, %c0_i32_0 : i32, i32
  }
  func.func @transform_12(%arg0: i32) -> (i32, i32) {
    %c0_i32 = arith.constant 0 : i32
    %c0_i32_0 = arith.constant 0 : i32
    %c0_i32_1 = arith.constant 0 : i32
    return %c0_i32, %c0_i32_0 : i32, i32
  }
  func.func @transform_13(%arg0: i32) -> (i32, i32) {
    %c0_i32 = arith.constant 0 : i32
    %c0_i32_0 = arith.constant 0 : i32
    return %arg0, %c0_i32 : i32, i32
  }
}

</mosaic_0001>

<bundles_post_ra>
// kernel: tpu_custom_call.1
= control target key start
LH: loop header
LB: loop body
LE: loop exit
PB: predicated region body
PF: predicated region fallthrough
CT: control target
= control target key end

     0   :  { %s4703_s0 = inlined_call_operand.hbm [shape: bf16[512,256], index: 0, kind: input, shape index: {}]   ;;  %s4704_s1 = inlined_call_operand.vmem [shape: bf16[256,128], index: 1, kind: input, shape index: {}]   ;;  %s4705_s2 = inlined_call_operand.hbm [shape: f32[1,128], index: 2, kind: input, shape index: {}]   ;;  %s4706_s3 = inlined_call_operand.vmem [shape: bf16[128,64], index: 3, kind: input, shape index: {}]   ;;  %s4707_s4 = inlined_call_operand.hbm [shape: f32[1,64], index: 4, kind: input, shape index: {}]   ;;  %s4708_s5 = inlined_call_operand.vmem [shape: bf16[64,32], index: 5, kind: input, shape index: {}]   ;;  %s4709_s6 = inlined_call_operand.vmem [shape: f32[1,32], index: 6, kind: input, shape index: {}]   ;;  %s4710_s7 = inlined_call_operand.hbm [shape: bf16[32,64], index: 7, kind: input, shape index: {}]   ;;  %s4711_s8 = inlined_call_operand.vmem [shape: f32[1,64], index: 8, kind: input, shape index: {}]   ;;  %s4712_s9 = inlined_call_operand.vmem [shape: bf16[64,128], index: 9, kind: input, shape index: {}]   ;;  %s4713_s10 = inlined_call_operand.vmem [shape: f32[1,128], index: 10, kind: input, shape index: {}]   ;;  %s4714_s11 = inlined_call_operand.hbm [shape: bf16[128,256], index: 11, kind: input, shape index: {}]   ;;  %s4715_s12 = inlined_call_operand.vmem [shape: f32[1,256], index: 12, kind: input, shape index: {}]   ;;  %s4716_s13 = inlined_call_operand.hbm [shape: f32[512,256], index: 13, kind: output, shape index: {}]  }
   0x1   :  { %4724 = sst [smem:[#allocation18_spill]] %s4705_s2 }
   0x2   :  { %4725 = sst [smem:[#allocation19_spill]] %s4713_s10 }
   0x3   :  { %4726 = sst [smem:[#allocation20_spill]] %s4715_s12 }
   0x4   :  { %4727 = sst [smem:[#allocation21_spill]] %s4716_s13 }
   0x5   :  { %18 = vsyncpa [#allocation3], 0 }
   0x6   :  { %20 = vsyncpa [#allocation3 + $0x1], 0 }
   0x7   :  { %21 = vsyncpa [#allocation6], 0 }
   0x8   :  { %22 = vsyncpa [#allocation9], 0 }
   0x9   :  { %23 = vsyncpa [#allocation4], 0 }
   0xa   :  { %25 = vsyncpa [#allocation4 + $0x1], 0  ;;  %s3896_s25 = smov 0   ;;  %s3898_s26 = smov 0  }
   0xb   :  { %s3900_s27 = smov 0   ;;  %s3902_s28 = smov 0  }
   0xc LB: > { %4728 = sst [smem:[#allocation16_spill]] %s3799_s25  ;;  %s3917_s29 = sadd.s32 4294967295, %s3811_s28   ;;  %s3811_s28 = sphi %s3902_s28, %s4756_s28   ;;  %s3807_s27 = sphi %s3900_s27, %s4755_s27   ;;  %s3803_s26 = sphi %s3898_s26, %s4754_s26   ;;  %s3799_s25 = sphi %s3896_s25, %s4753_s25  }
   0xd   : > { %s2730_s30 = sadd.s32 4294967294, %s3811_s28   ;;  %p51_p0 = scmp.ne.s32.totalorder %s3803_s26, %s3799_s25 }
   0xe   : > { %p4720_p1 = scmp.eq.s32.totalorder %s3917_s29, 0  ;;  %p333_p3 = scmp.eq.s32.totalorder %s2730_s30, 1 }
   0xf   : > { %p2731_p5 = scmp.ge.s32.totalorder %s3811_s28, 1  ;;  %p340_p7 = scmp.lt.s32.totalorder %s3811_s28, 3 }
  0x10   : > { %p3926_p4 = por %p4720_p1, %p51_p0  ;;  %p3931_p6 = por %p333_p3, %p51_p0 }
  0x11   : > { %p3936_p8 = pnand %p2731_p5, %p340_p7  ;;  %s3813_s17 = smov [#allocation5]  }
  0x12   : > { %s4729_s14 = scalar_select %p3926_p4, 1, 0 }
  0x13   : > { %s4730_s15 = scalar_select %p3931_p6, 1, 0 }
  0x14   : > { %s4732_s16 = scalar_select %p3936_p8, 1, 0 }
  0x15   : > { %4731 = sst [smem:[#allocation17_spill]] %s4730_s15  ;;  %s356_s18 = sshll.u32 %s3813_s17, 4  ;;  %s357_s18 = int_to_ptr.vmem [resolvable:$true] %s356_s18 }
  0x16   : > { %p3287_p10 = pneg %p3936_p8  ;;  %s3814_s19 = smov [#allocation8]  }
  0x17   : > { %s386_s20 = sshll.u32 %s3814_s19, 4  ;;  %s3815_s22 = smov [#allocation7]   ;;  %s3949_s20 = int_to_ptr.vmem [resolvable:$true] %s386_s20 }
  0x18   : > { %p3945_p11 = pnand %p3287_p10, %p4720_p1  ;;  %s3951_s23 = sshll.u32 %s3815_s22, 4  ;;  %s371_s23 = int_to_ptr.vmem [resolvable:$true] %s3951_s23 }
  0x19   : > { %s4734_s2 = sld [smem:[#allocation18_spill]] }
  0x1a   : > { %p3961_p13 = pneg %p3945_p11 }
  0x1f   : > { %s3595_s17 = scalar_lea.hbm %s4734_s2, 16 }
  0x20   : > { %p3596_p12 = scmp.ne.s32.totalorder %s4734_s2, %s3595_s17  ;;  %p3602_p5 = scmp.lt.u32.totalorder %s3595_s17, %s4734_s2 }
  0x22   : > { %p3598_p0 = pnand %p3961_p13, %p3596_p12 }
  0x24   : > { %p3599_p3 = pneg %p3598_p0 }
  0x26   : > { %p3604_p7 = pnand %p3602_p5, %p3599_p3 }
  0x28   : > { %3607 = shalt.err (!%p3604_p7)
}
  0x29   : > { %s3608_s24 = scalar_lea.vmem %s357_s18, 16  ;;  %s3615_s25 = scalar_lea.vmem %s357_s18, 32 }
  0x2a   : > { %p3609_p10 = scmp.ne.s32.totalorder %s357_s18, %s3608_s24  ;;  %p3616_p2 = scmp.lt.s32.totalorder %s357_s18, %s357_s18 }
  0x2b   : > { %p3617_p6 = scmp.lt.s32.totalorder %s3615_s25, %s3608_s24 }
  0x2c   : > { %p3611_p9 = pnand %p3609_p10, %p3961_p13 }
  0x2d   : > { %p3618_p4 = por %p3617_p6, %p3616_p2 }
  0x2e   : > { %p3612_p1 = pneg %p3611_p9 }
  0x30   : > { %p3619_p8 = pnand %p3618_p4, %p3612_p1 }
  0x32   : > { %3622 = shalt.err (!%p3619_p8)
}
  0x33   : > { %3290 = dma.hbm_to_vmem [thread:$0]  (!%p3945_p11), %s4734_s2, 16, %s357_s18, [#allocation6]  }
  0x34   : > { %s3623_s22 = scalar_lea.hbm %s4710_s7, 256 }
  0x35   : > { %p3624_p9 = scmp.ne.s32.totalorder %s4710_s7, %s3623_s22  ;;  %p3630_p1 = scmp.lt.u32.totalorder %s3623_s22, %s4710_s7 }
  0x37   : > { %p3626_p12 = pnand %p3624_p9, %p3961_p13 }
  0x39   : > { %p3627_p2 = pneg %p3626_p12 }
  0x3b   : > { %p3632_p4 = pnand %p3630_p1, %p3627_p2 }
  0x3d   : > { %3635 = shalt.err (!%p3632_p4)
}
  0x3e   : > { %s3636_s18 = scalar_lea.vmem %s3949_s20, 256  ;;  %p3644_p3 = scmp.lt.s32.totalorder %s3949_s20, %s3949_s20 }
  0x3f   : > { %p3637_p6 = scmp.ne.s32.totalorder %s3949_s20, %s3636_s18  ;;  %p3645_p5 = scmp.lt.s32.totalorder %s3636_s18, %s3636_s18 }
  0x41   : > { %p3639_p8 = pnand %p3637_p6, %p3961_p13  ;;  %p3646_p7 = por %p3645_p5, %p3644_p3 }
  0x43   : > { %p3640_p0 = pneg %p3639_p8 }
  0x45   : > { %p3647_p10 = pnand %p3646_p7, %p3640_p0 }
  0x47   : > { %3650 = shalt.err (!%p3647_p10)
}
  0x48   : > { %s3816_s10 = smov 64   ;;  %s3817_s12 = smov 4  }
  0x49   : > { %3296 = dma.hbm_to_vmem [thread:$0]  (!%p3945_p11), %s4710_s7, 256, %s3949_s20, [#allocation9], %s3816_s10, %s3816_s10, %s3817_s12  }
  0x4a   : > { %s3651_s22 = scalar_lea.hbm %s4707_s4, 16 }
  0x4b   : > { %p3652_p9 = scmp.ne.s32.totalorder %s4707_s4, %s3651_s22  ;;  %p3658_p1 = scmp.lt.u32.totalorder %s3651_s22, %s4707_s4 }
  0x4d   : > { %p3654_p12 = pnand %p3652_p9, %p3961_p13 }
  0x4f   : > { %p3655_p2 = pneg %p3654_p12 }
  0x51   : > { %p3660_p4 = pnand %p3658_p1, %p3655_p2 }
  0x53   : > { %3663 = shalt.err (!%p3660_p4)
}
  0x54   : > { %s3664_s15 = scalar_lea.vmem %s371_s23, 16  ;;  %s3671_s20 = scalar_lea.vmem %s371_s23, 32 }
  0x55   : > { %p3665_p6 = scmp.ne.s32.totalorder %s371_s23, %s3664_s15  ;;  %p3672_p3 = scmp.lt.s32.totalorder %s371_s23, %s371_s23 }
  0x56   : > { %p3673_p5 = scmp.lt.s32.totalorder %s3671_s20, %s3664_s15 }
  0x57   : > { %p3667_p8 = pnand %p3665_p6, %p3961_p13 }
  0x58   : > { %p3674_p7 = por %p3673_p5, %p3672_p3 }
  0x59   : > { %p3668_p0 = pneg %p3667_p8 }
  0x5b   : > { %p3675_p10 = pnand %p3674_p7, %p3668_p0 }
  0x5d   : > { %3678 = shalt.err (!%p3675_p10)
}
  0x5e   : > { %3293 = dma.hbm_to_vmem [thread:$0]  (!%p3945_p11), %s4707_s4, 16, %s371_s23, [#allocation6]  }
  0x5f   : > { %s3818_s2 = smov [#allocation10]   ;;  %s3679_s22 = scalar_lea.hbm %s4714_s11, 2048 }
  0x60   : > { %s408_s30 = sshll.u32 %s3818_s2, 4  ;;  %p3680_p9 = scmp.ne.s32.totalorder %s4714_s11, %s3679_s22  ;;  %s409_s30 = int_to_ptr.vmem [resolvable:$true] %s408_s30 }
  0x61   : > { %p3686_p1 = scmp.lt.u32.totalorder %s3679_s22, %s4714_s11 }
  0x62   : > { %p3682_p12 = pnand %p3680_p9, %p3961_p13 }
  0x64   : > { %p3683_p2 = pneg %p3682_p12 }
  0x66   : > { %p3688_p4 = pnand %p3686_p1, %p3683_p2 }
  0x68   : > { %3691 = shalt.err (!%p3688_p4)
}
  0x69   : > { %s3692_s23 = scalar_lea.vmem %s409_s30, 2048  ;;  %p3700_p3 = scmp.lt.s32.totalorder %s409_s30, %s409_s30 }
  0x6a   : > { %p3693_p6 = scmp.ne.s32.totalorder %s409_s30, %s3692_s23  ;;  %p3701_p5 = scmp.lt.s32.totalorder %s3692_s23, %s3692_s23 }
  0x6c   : > { %p3695_p8 = pnand %p3693_p6, %p3961_p13  ;;  %p3702_p7 = por %p3701_p5, %p3700_p3 }
  0x6e   : > { %p3696_p0 = pneg %p3695_p8 }
  0x70   : > { %p3703_p10 = pnand %p3702_p7, %p3696_p0 }
  0x72   : > { %3706 = shalt.err (!%p3703_p10)
}
  0x73   : > { %s4723_s20 = smov 128   ;;  %s3820_s19 = smov 8  }
  0x74   : > { %3299 = dma.hbm_to_vmem [thread:$0]  (!%p3945_p11), %s4714_s11, 2048, %s409_s30, [#allocation9], %s4723_s20, %s4723_s20, %s3820_s19  }
  0x75   : > { %s4041_s2 = sadd.s32 1, %s3811_s28   ;;  %s38_s17 = sadd.s32 1, %s3807_s27 }
  0x76   : > { %s35_s13 = ssub.s32 %s3811_s28, %s4041_s2  ;;  %p45_p9 = scmp.ne.s32.totalorder %s3807_s27, %s3803_s26 }
  0x77   : > { %p36_p13 = scmp.eq.s32.totalorder %s35_s13, 0  ;;  %p46_p12 = scmp.eq.s32.totalorder %s3811_s28, 0 }
  0x78   : > { %p4736_p1 = scmp.eq.s32.totalorder %s3917_s29, 1  ;;  %p3312_p6 = scmp.lt.s32.totalorder %s3811_s28, 2 }
  0x79   : > { %s4050_s22 = scalar_select %p36_p13, %s3807_s27, %s38_s17  }
  0x7a   : > { %p47_p2 = por %p46_p12, %p45_p9  ;;  %p4054_p4 = por %p4736_p1, %p45_p9 }
  0x7b   : > { %s425_s24 = sand.u32 1, %s3807_s27   ;;  %s2890_s30 = sshll.u32 %s3811_s28, 12 }
  0x7c   : > { %s2737_s25 = sshll.u32 %s425_s24, 8  ;;  %s4064_s23 = scalar_lea.hbm %s4703_s0, %s2890_s30 }
  0x7d   : > { %s429_s10 = scalar_lea.vmem [#allocation2], %s2737_s25  ;;  %p4068_p11 = pnand %p3312_p6, %p47_p2 }
  0x7e   : > { %s437_s12 = sshll.u32 %s429_s10, 4  ;;  %s4072_s17 = scalar_lea.sflag [#allocation3], %s425_s24  ;;  %s4066_s12 = int_to_ptr.vmem [resolvable:$true] %s437_s12 }
  0x7f   : > { %s3707_s20 = scalar_lea.hbm %s4064_s23, 4096  ;;  %p3709_p0 = pneg %p4068_p11 }
  0x80   : > { %p3708_p8 = scmp.ne.s32.totalorder %s4064_s23, %s3707_s20  ;;  %s3712_s18 = scalar_lea.hbm %s4703_s0, 8192 }
  0x81   : > { %p3713_p7 = scmp.lt.u32.totalorder %s4064_s23, %s4703_s0  ;;  %p3714_p10 = scmp.lt.u32.totalorder %s3712_s18, %s3707_s20 }
  0x82   : > { %p3710_p3 = pnand %p3709_p0, %p3708_p8  ;;  %p3716_p9 = scmp.lt.u32.totalorder %s3707_s20, %s4064_s23 }
  0x83   : > { %p3715_p13 = por %p3714_p10, %p3713_p7 }
  0x84   : > { %p3711_p5 = pneg %p3710_p3 }
  0x85   : > { %p3717_p12 = por %p3716_p9, %p3715_p13 }
  0x87   : > { %p3718_p2 = pnand %p3717_p12, %p3711_p5 }
  0x89   : > { %3721 = shalt.err (!%p3718_p2)
}
  0x8a   : > { %s3722_s24 = scalar_lea.vmem %s4066_s12, 4096  ;;  %s3821_s25 = smov [#allocation2]  }
  0x8b   : > { %p3723_p1 = scmp.ne.s32.totalorder %s4066_s12, %s3722_s24  ;;  %s3727_s30 = sshll.u32 %s3821_s25, 4  ;;  %s3728_s30 = int_to_ptr.vmem [resolvable:$false] %s3727_s30 }
  0x8c   : > { %s3729_s15 = scalar_lea.vmem %s3728_s30, 8192  ;;  %p3730_p3 = scmp.lt.s32.totalorder %s4066_s12, %s3728_s30 }
  0x8d   : > { %p3725_p6 = pnand %p3723_p1, %p3709_p0  ;;  %p3731_p7 = scmp.lt.s32.totalorder %s3729_s15, %s3722_s24 }
  0x8f   : > { %p3726_p8 = pneg %p3725_p6  ;;  %p3732_p10 = por %p3731_p7, %p3730_p3 }
  0x91   : > { %p3733_p13 = pnand %p3732_p10, %p3726_p8 }
  0x93   : > { %3736 = shalt.err (!%p3733_p13)
}
  0x94   : > { %s4739_s20 = smov 128   ;;  %p4740_p0 = scmp.ne.s32.totalorder %s4732_s16, 0 }
  0x95   : > { %3303 = dma.hbm_to_vmem [thread:$0]  (!%p4068_p11), %s4064_s23, 4096, %s4066_s12, %s4072_s17, %s4739_s20, %s4739_s20, %s3820_s19  }
  0x96   : > { %449 = sbr.rel (%p4740_p0) target bundleno = 1677 (0x68d), region = 72  ;;  %s4106_s18 = sand.u32 (!%p4740_p0), 1, %s3803_s26  }
  0x97   : > { %s2742_s10 = sshll.u32 (!%p4740_p0), %s4106_s18, 8  ;;  %s452_s24 = scalar_lea.sflag (!%p4740_p0), [#allocation3], %s4106_s18 }
  0x98   : > { %s4110_s25 = scalar_lea.vmem (!%p4740_p0), [#allocation2], %s2742_s10  ;;  %p4741_p5 = scmp.ne.s32.totalorder (!%p4740_p0), %s4729_s14, 0 }
  0x9d   : > { %3782 = dma.done.wait (%p4741_p5), %s452_s24, 4096  }
  0x9e   : > { %3784 = vsyncadd (%p4741_p5), %s452_s24, 4294963200  ;;  %p4742_p11 = scmp.eq.s32.totalorder %s3917_s29, 0 }
  0xa0   : > { %3786 = dma.done.wait (%p4742_p11), [#allocation6], 32   ;;  %p4743_p9 = pmov %p4742_p11 }
  0xa2   : > { %3788 = vsyncadd (%p4743_p9), [#allocation6], 4294967264  ;;  %p4744_p12 = pmov %p4743_p9 }
  0xa3   : > { %p4745_p2 = pmov %p4743_p9 }
  0xa4   : > { %3790 = dma.done.wait (%p4744_p12), [#allocation9], 2304  }
  0xa5   : > { %3792 = vsyncadd (%p4745_p2), [#allocation9], 4294964992  ;;  %v3361_v0 = vld [vmem:[%s4704_s1 + $0x40] sm:$0xff]   ;;  %v3363_v2 = vld [vmem:[%s4704_s1 + $0x48] sm:$0xff]   ;;  %vm1372_vm0 = vcmask 523264   ;;  %vm1621_vm1 = vcmask 261120  }
  0xa6   : > { %v3362_v1 = vld [vmem:[%s4704_s1] sm:$0xff]   ;;  %2893 = vmatprep.subr.bf16.mxu0 %v3361_v0  ;;  %3251 = vmatprep.subr.bf16.mxu1 %v3361_v0  ;;  %v3364_v3 = vld [vmem:[%s4704_s1 + $0x8] sm:$0xff]   ;;  %v3365_v4 = vld [vmem:[%s4704_s1 + $0x50] sm:$0xff]   ;;  %s4746_s15 = sld [smem:[#allocation19_spill]]  ;;  %s4747_s24 = sld [smem:[#allocation20_spill]] }
  0xa7   : > { %2894 = vmatpush3.bf16.msra.mxu0 %v3362_v1  ;;  %3259 = vmatpush3.bf16.msra.mxu1 %v3362_v1  ;;  %v3366_v5 = vld [vmem:[%s4704_s1 + $0x10] sm:$0xff]   ;;  %v3367_v6 = vld [vmem:[%s4704_s1 + $0x58] sm:$0xff]   ;;  %v3369_v8 = vld [vmem:[%s4704_s1 + $0x60] sm:$0xff]   ;;  %s2747_s16 = sshll.u32 %s4106_s18, 9  ;;  %s4748_s13 = sld [smem:[#allocation21_spill]] }
  0xa8   : > { %2895 = vmatprep.subr.bf16.mxu0 %v3363_v2  ;;  %3252 = vmatprep.subr.bf16.mxu1 %v3363_v2  ;;  %v3368_v7 = vld [vmem:[%s4704_s1 + $0x18] sm:$0xff]   ;;  %v3370_v9 = vld [vmem:[%s4704_s1 + $0x20] sm:$0xff]   ;;  %v3371_v10 = vld [vmem:[%s4704_s1 + $0x68] sm:$0xff]   ;;  %s4530_s19 = scalar_lea.vmem [#allocation11], %s2747_s16 }
  0xa9   : > { %v3379_v11 = vld [vmem:[%s4110_s25 + $0x4] ss:$8 sps:$4 sm:$0xff]   ;;  %v3373_v13 = vld [vmem:[%s4704_s1 + $0x70] sm:$0xff]   ;;  %v3375_v15 = vld [vmem:[%s4704_s1 + $0x78] sm:$0xff]   ;;  %s2619_s23 = sshll.u32 %s4530_s19, 4  ;;  %s4656_s23 = int_to_ptr.vmem [resolvable:$true] %s2619_s23 }
  0xaa   : > { %v3372_v12 = vld [vmem:[%s4704_s1 + $0x28] sm:$0xff]   ;;  %876 = vmatprep.mubr.bf16.mxu0 %v3379_v11  ;;  %v3374_v14 = vld [vmem:[%s4704_s1 + $0x30] sm:$0xff]   ;;  %v3376_v17 = vld [vmem:[%s4704_s1 + $0x38] sm:$0xff]   ;;  %s3737_s30 = scalar_lea.vmem %s4656_s23, 8192 }
  0xab   : > { %2896 = vmatpush3.bf16.msra.mxu0 %v3364_v3  ;;  %3260 = vmatpush3.bf16.msra.mxu1 %v3364_v3  ;;  %v3397_v16 = vld [vmem:[%s4110_s25 + $0x84] ss:$8 sps:$4 sm:$0xff]   ;;  %v3377_v18 = vld [vmem:[%s4110_s25] ss:$8 sps:$4 sm:$0xff]   ;;  %v3380_v19 = vld [vmem:[%s4110_s25 + $0x14] ss:$8 sps:$4 sm:$0xff]   ;;  %p3738_p1 = scmp.ne.s32.totalorder %s4656_s23, %s3737_s30 }
  0xac   : > { %2897 = vmatprep.subr.bf16.mxu0 %v3365_v4  ;;  %3253 = vmatprep.subr.bf16.mxu1 %v3365_v4  ;;  %v3395_v20 = vld [vmem:[%s4110_s25 + $0x80] ss:$8 sps:$4 sm:$0xff]   ;;  %v3401_v21 = vld [vmem:[%s4110_s25 + $0x94] ss:$8 sps:$4 sm:$0xff]   ;;  %v3382_v22 = vld [vmem:[%s4110_s25 + $0x10] ss:$8 sps:$4 sm:$0xff]  }
  0xad   : > { %940 = vmatprep.mubr.bf16.mxu1 %v3397_v16  ;;  %v3383_v23 = vld [vmem:[%s4110_s25 + $0x24] ss:$8 sps:$4 sm:$0xff]   ;;  %v3403_v24 = vld [vmem:[%s4110_s25 + $0x90] ss:$8 sps:$4 sm:$0xff]   ;;  %v3385_v29 = vld [vmem:[%s4110_s25 + $0x20] ss:$8 sps:$4 sm:$0xff]   ;;  %p3739_p6 = pnand %p3738_p1, %p4054_p4 }
  0xae   : > { %v3425_v25 = vld [vmem:[%s4706_s3] sm:$0xff]   ;;  %v3426_v26 = vld [vmem:[%s4706_s3 + $0x8] sm:$0xff]   ;;  %v3427_v28 = vld [vmem:[%s4706_s3 + $0x10] sm:$0xff]  }
  0xaf   : > { %2898 = vmatpush3.bf16.msra.mxu0 %v3366_v5  ;;  %3261 = vmatpush3.bf16.msra.mxu1 %v3366_v5  ;;  %v3407_v27 = vld [vmem:[%s4110_s25 + $0xa4] ss:$8 sps:$4 sm:$0xff]   ;;  %v3428_v30 = vld [vmem:[%s4706_s3 + $0x18] sm:$0xff]   ;;  %v3409_v32 = vld [vmem:[%s4110_s25 + $0xa0] ss:$8 sps:$4 sm:$0xff]   ;;  %p3740_p8 = pneg %p3739_p6 }
  0xb0   : > { %2899 = vmatprep.subr.bf16.mxu0 %v3367_v6  ;;  %3254 = vmatprep.subr.bf16.mxu1 %v3367_v6  ;;  %v3386_v31 = vld [vmem:[%s4110_s25 + $0x34] ss:$8 sps:$4 sm:$0xff]   ;;  %v3429_v34 = vld [vmem:[%s4706_s3 + $0x20] sm:$0xff]   ;;  %v3388_v35 = vld [vmem:[%s4110_s25 + $0x30] ss:$8 sps:$4 sm:$0xff]  }
  0xb1   : > { %v3410_v33 = vld [vmem:[%s4110_s25 + $0xb4] ss:$8 sps:$4 sm:$0xff]   ;;  %v3430_v36 = vld [vmem:[%s4706_s3 + $0x28] sm:$0xff]   ;;  %v3412_v38 = vld [vmem:[%s4110_s25 + $0xb0] ss:$8 sps:$4 sm:$0xff]  }
  0xb2   : > { %v3389_v37 = vld [vmem:[%s4110_s25 + $0x44] ss:$8 sps:$4 sm:$0xff]   ;;  %v3391_v40 = vld [vmem:[%s4110_s25 + $0x40] ss:$8 sps:$4 sm:$0xff]   ;;  %v3392_v41 = vld [vmem:[%s4110_s25 + $0x54] ss:$8 sps:$4 sm:$0xff]  }
  0xb3   : > { %2900 = vmatpush3.bf16.msra.mxu0 %v3368_v7  ;;  %3262 = vmatpush3.bf16.msra.mxu1 %v3368_v7  ;;  %v3413_v39 = vld [vmem:[%s4110_s25 + $0xc4] ss:$8 sps:$4 sm:$0xff]   ;;  %v3415_v42 = vld [vmem:[%s4110_s25 + $0xc0] ss:$8 sps:$4 sm:$0xff]   ;;  %v3416_v43 = vld [vmem:[%s4110_s25 + $0xd4] ss:$8 sps:$4 sm:$0xff]  }
  0xb4   : > { %2901 = vmatprep.subr.bf16.mxu0 %v3369_v8  ;;  %3255 = vmatprep.subr.bf16.mxu1 %v3369_v8  ;;  %v3394_v44 = vld [vmem:[%s4110_s25 + $0x50] ss:$8 sps:$4 sm:$0xff]   ;;  %v3398_v45 = vld [vmem:[%s4110_s25 + $0x64] ss:$8 sps:$4 sm:$0xff]   ;;  %v3400_v48 = vld [vmem:[%s4110_s25 + $0x60] ss:$8 sps:$4 sm:$0xff]  }
  0xb5   : > { %v3418_v46 = vld [vmem:[%s4110_s25 + $0xd0] ss:$8 sps:$4 sm:$0xff]   ;;  %v3419_v47 = vld [vmem:[%s4110_s25 + $0xe4] ss:$8 sps:$4 sm:$0xff]   ;;  %v3404_v49 = vld [vmem:[%s4110_s25 + $0x74] ss:$8 sps:$4 sm:$0xff]  }
  0xb6   : > { %v3421_v50 = vld [vmem:[%s4110_s25 + $0xe0] ss:$8 sps:$4 sm:$0xff]   ;;  %v3422_v51 = vld [vmem:[%s4110_s25 + $0xf4] ss:$8 sps:$4 sm:$0xff]   ;;  %v3406_v52 = vld [vmem:[%s4110_s25 + $0x70] ss:$8 sps:$4 sm:$0xff]  }
  0xb7   : > { %2902 = vmatpush3.bf16.msra.mxu0 %v3370_v9  ;;  %3263 = vmatpush3.bf16.msra.mxu1 %v3370_v9  ;;  %v3424_v53 = vld [vmem:[%s4110_s25 + $0xf0] ss:$8 sps:$4 sm:$0xff]   ;;  %v4231_v56 = vld [vmem:[%s4708_s5] sm:$0xff]   ;;  %s2892_s25 = sshll.u32 %s3917_s29, 13  ;;  %s2605_s29 = scalar_lea.sflag [#allocation4], %s4106_s18 }
  0xb8   : > { %2903 = vmatprep.subr.bf16.mxu0 %v3371_v10  ;;  %3256 = vmatprep.subr.bf16.mxu1 %v3371_v10  ;;  %v3431_v54 = vld [vmem:[%s4706_s3 + $0x30] sm:$0xff]   ;;  %v3432_v55 = vld [vmem:[%s4706_s3 + $0x38] sm:$0xff]   ;;  %v4234_v58 = vld [vmem:[#allocation5] ss:$0 sm:$0xff]  ;;  %s4654_s17 = scalar_lea.hbm %s4748_s13, %s2892_s25 }
  0xbb   : > { %2904 = vmatpush3.bf16.msra.mxu0 %v3372_v12  ;;  %3264 = vmatpush3.bf16.msra.mxu1 %v3372_v12 }
  0xbc   : > { %2905 = vmatprep.subr.bf16.mxu0 %v3373_v13  ;;  %3257 = vmatprep.subr.bf16.mxu1 %v3373_v13 }
  0xbf   : > { %2906 = vmatpush3.bf16.msra.mxu0 %v3374_v14  ;;  %3265 = vmatpush3.bf16.msra.mxu1 %v3374_v14 }
  0xc0   : > { %2907 = vmatprep.subr.bf16.mxu0 %v3375_v15  ;;  %3258 = vmatprep.subr.bf16.mxu1 %v3375_v15 }
  0xc3   : > { %2908 = vmatpush3.bf16.msra.mxu0 %v3376_v17  ;;  %3266 = vmatpush3.bf16.msra.mxu1 %v3376_v17 }
  0xc4   : > { %3087 = vmatprep.subr.bf16.mxu1 %v3425_v25 }
  0xc6   : > { %877 = vmatmul.mubr.bf16.vlgmr.msra.gmra.mrb[0].mxu0 %v3377_v18  ;;  %941 = vmatmul.mubr.bf16.vlgmr.msra.gmra.mrb[0].mxu1 %v3395_v20 }
  0xc7   : > { %884 = vmatprep.mubr.bf16.mxu0 %v3380_v19  ;;  %948 = vmatprep.mubr.bf16.mxu1 %v3401_v21 }
  0xc8   : > { %3088 = vmatpush3.bf16.msra.mxu1 %v3425_v25 }
  0xc9   : > { %3089 = vmatprep.subr.bf16.mxu1 %v3426_v26 }
  0xcc   : > { %3090 = vmatpush3.bf16.msra.mxu1 %v3426_v26 }
  0xcd   : > { %3091 = vmatprep.subr.bf16.mxu1 %v3427_v28 }
  0xce   : > { %885 = vmatmul.mubr.bf16.gmra.mrb[4].mxu0 %v3382_v22  ;;  %949 = vmatmul.mubr.bf16.gmra.mrb[4].mxu1 %v3403_v24 }
  0xcf   : > { %892 = vmatprep.mubr.bf16.mxu0 %v3383_v23  ;;  %956 = vmatprep.mubr.bf16.mxu1 %v3407_v27 }
  0xd0   : > { %3092 = vmatpush3.bf16.msra.mxu1 %v3427_v28 }
  0xd1   : > { %3093 = vmatprep.subr.bf16.mxu1 %v3428_v30 }
  0xd4   : > { %3094 = vmatpush3.bf16.msra.mxu1 %v3428_v30 }
  0xd5   : > { %3095 = vmatprep.subr.bf16.mxu1 %v3429_v34 }
  0xd6   : > { %893 = vmatmul.mubr.bf16.gmra.mrb[8].mxu0 %v3385_v29  ;;  %957 = vmatmul.mubr.bf16.gmra.mrb[8].mxu1 %v3409_v32 }
  0xd7   : > { %900 = vmatprep.mubr.bf16.mxu0 %v3386_v31  ;;  %964 = vmatprep.mubr.bf16.mxu1 %v3410_v33 }
  0xd8   : > { %3096 = vmatpush3.bf16.msra.mxu1 %v3429_v34 }
  0xd9   : > { %3097 = vmatprep.subr.bf16.mxu1 %v3430_v36 }
  0xdc   : > { %3098 = vmatpush3.bf16.msra.mxu1 %v3430_v36 }
  0xdd   : > { %3099 = vmatprep.subr.bf16.mxu1 %v3431_v54 }
  0xde   : > { %901 = vmatmul.mubr.bf16.gmra.mrb[12].mxu0 %v3388_v35  ;;  %965 = vmatmul.mubr.bf16.gmra.mrb[12].mxu1 %v3412_v38 }
  0xdf   : > { %908 = vmatprep.mubr.bf16.mxu0 %v3389_v37  ;;  %972 = vmatprep.mubr.bf16.mxu1 %v3413_v39 }
  0xe0   : > { %3100 = vmatpush3.bf16.msra.mxu1 %v3431_v54  ;;  %v3435_v54 = vld [vmem:[%s4708_s5 + $0x10] sm:$0xff]  }
  0xe1   : > { %3101 = vmatprep.subr.bf16.mxu1 %v3432_v55 }
  0xe4   : > { %3102 = vmatpush3.bf16.msra.mxu1 %v3432_v55 }
  0xe5   : > { %3135 = vmatprep.subr.bf16.mxu1 %v4231_v56 }
  0xe6   : > { %909 = vmatmul.mubr.bf16.gmra.mrb[16].mxu0 %v3391_v40  ;;  %973 = vmatmul.mubr.bf16.gmra.mrb[16].mxu1 %v3415_v42 }
  0xe7   : > { %916 = vmatprep.mubr.bf16.mxu0 %v3392_v41  ;;  %980 = vmatprep.mubr.bf16.mxu1 %v3416_v43  ;;  %v3434_v43 = vld [vmem:[%s4708_s5 + $0x8] sm:$0xff]  }
  0xee   : > { %917 = vmatmul.mubr.bf16.gmra.mrb[20].mxu0 %v3394_v44  ;;  %981 = vmatmul.mubr.bf16.gmra.mrb[20].mxu1 %v3418_v46 }
  0xef   : > { %924 = vmatprep.mubr.bf16.mxu0 %v3398_v45  ;;  %988 = vmatprep.mubr.bf16.mxu1 %v3419_v47 }
  0xf6   : > { %925 = vmatmul.mubr.bf16.gmra.mrb[24].mxu0 %v3400_v48  ;;  %989 = vmatmul.mubr.bf16.gmra.mrb[24].mxu1 %v3421_v50 }
  0xf7   : > { %932 = vmatprep.mubr.bf16.mxu0 %v3404_v49  ;;  %996 = vmatprep.mubr.bf16.mxu1 %v3422_v51 }
  0xfe   : > { %933 = vmatmul.mubr.bf16.gmra.mrb[28].mxu0 %v3406_v52  ;;  %997 = vmatmul.mubr.bf16.gmra.mrb[28].mxu1 %v3424_v53 }
 0x199   : > { %v2909_v57 = vpop.f32.mrb[0].mxu0  ;;  %v2957_v60 = vpop.f32.mrb[0].mxu1 }
 0x19a   : > { %v2910_v59 = vpop.f32.mrb[1].mxu0  ;;  %v2958_v63 = vpop.f32.mrb[1].mxu1 }
 0x19b   : > { %v2911_v61 = vadd.f32 %v2910_v59, %v2909_v57  ;;  %v2912_v62 = vpop.f32.mrb[2].mxu0  ;;  %v2959_v1 = vadd.f32 %v2958_v63, %v2957_v60  ;;  %v2960_v2 = vpop.f32.mrb[2].mxu1 }
 0x19c   : > { %v2913_v0 = vpop.f32.mrb[3].mxu0  ;;  %v2961_v5 = vpop.f32.mrb[3].mxu1 }
 0x19d   : > { %v879_v3 = vadd.f32 %v2911_v61, %v4234_v58  ;;  %v2914_v4 = vadd.f32 %v2913_v0, %v2912_v62  ;;  %v943_v6 = vadd.f32 %v2959_v1, %v4234_v58  ;;  %v2962_v7 = vadd.f32 %v2961_v5, %v2960_v2 }
 0x19f   : > { %v882_v8 = vadd.f32 %v2914_v4, %v4234_v58  ;;  %v1021_v9 = vmax.f32 %v943_v6, 0.0  ;;  %v946_v10 = vadd.f32 %v2962_v7, %v4234_v58  ;;  %v1005_v11 = vmax.f32 %v879_v3, 0.0  ;;  %v3436_v4 = vld [vmem:[%s4708_s5 + $0x18] sm:$0xff]  }
 0x1a1   : > { %v1006_v12 = vmax.f32 %v882_v8, 0.0  ;;  %v2915_v13 = vpop.f32.mrb[4].mxu0  ;;  %v1022_v15 = vmax.f32 %v946_v10, 0.0  ;;  %v2963_v16 = vpop.f32.mrb[4].mxu1 }
 0x1a2   : > { %v2916_v14 = vpop.f32.mrb[5].mxu0  ;;  %v2964_v20 = vpop.f32.mrb[5].mxu1 }
 0x1a3   : > { %v2917_v17 = vadd.f32 %v2916_v14, %v2915_v13  ;;  %v2918_v18 = vpop.f32.mrb[6].mxu0  ;;  %v1037_v19 = vpack.c.bf16 %v1006_v12, %v1005_v11  ;;  %v2965_v22 = vadd.f32 %v2964_v20, %v2963_v16  ;;  %v2966_v23 = vpop.f32.mrb[6].mxu1  ;;  %v4240_v24 = vpack.c.bf16 %v1022_v15, %v1021_v9 }
 0x1a4   : > { %v2919_v21 = vpop.f32.mrb[7].mxu0  ;;  %v2967_v27 = vpop.f32.mrb[7].mxu1 }
 0x1a5   : > { %v887_v25 = vadd.f32 %v2917_v17, %v4234_v58  ;;  %v2920_v26 = vadd.f32 %v2919_v21, %v2918_v18  ;;  %3103 = vmatprep.mubr.bf16.mxu1 %v1037_v19  ;;  %v951_v28 = vadd.f32 %v2965_v22, %v4234_v58  ;;  %v2968_v29 = vadd.f32 %v2967_v27, %v2966_v23 }
 0x1a7   : > { %v890_v30 = vadd.f32 %v2920_v26, %v4234_v58  ;;  %v1023_v31 = vmax.f32 %v951_v28, 0.0  ;;  %v954_v32 = vadd.f32 %v2968_v29, %v4234_v58  ;;  %v1007_v33 = vmax.f32 %v887_v25, 0.0 }
 0x1a9   : > { %v1008_v34 = vmax.f32 %v890_v30, 0.0  ;;  %v2921_v35 = vpop.f32.mrb[8].mxu0  ;;  %v1024_v37 = vmax.f32 %v954_v32, 0.0  ;;  %v2969_v38 = vpop.f32.mrb[8].mxu1 }
 0x1aa   : > { %v2922_v36 = vpop.f32.mrb[9].mxu0  ;;  %v2970_v42 = vpop.f32.mrb[9].mxu1 }
 0x1ab   : > { %v1038_v39 = vpack.c.bf16 %v1008_v34, %v1007_v33  ;;  %v2923_v40 = vadd.f32 %v2922_v36, %v2921_v35  ;;  %v2924_v41 = vpop.f32.mrb[10].mxu0  ;;  %v2971_v45 = vadd.f32 %v2970_v42, %v2969_v38  ;;  %v2972_v46 = vpop.f32.mrb[10].mxu1  ;;  %v4249_v47 = vpack.c.bf16 %v1024_v37, %v1023_v31 }
 0x1ac   : > { %v2925_v44 = vpop.f32.mrb[11].mxu0  ;;  %v2973_v50 = vpop.f32.mrb[11].mxu1 }
 0x1ad   : > { %v895_v48 = vadd.f32 %v2923_v40, %v4234_v58  ;;  %v2926_v49 = vadd.f32 %v2925_v44, %v2924_v41  ;;  %3104 = vmatmul.mubr.bf16.vlgmr.msra.gmra.mrb[32].mxu1 %v1038_v39  ;;  %v959_v51 = vadd.f32 %v2971_v45, %v4234_v58  ;;  %v2974_v52 = vadd.f32 %v2973_v50, %v2972_v46 }
 0x1ae   : > { %3136 = vmatpush3.bf16.msra.mxu1 %v4231_v56 }
 0x1af   : > { %v898_v53 = vadd.f32 %v2926_v49, %v4234_v58  ;;  %3137 = vmatprep.subr.bf16.mxu1 %v3434_v43  ;;  %v1025_v55 = vmax.f32 %v959_v51, 0.0  ;;  %v962_v57 = vadd.f32 %v2974_v52, %v4234_v58  ;;  %v1009_v59 = vmax.f32 %v895_v48, 0.0 }
 0x1b1   : > { %v1010_v60 = vmax.f32 %v898_v53, 0.0  ;;  %v2927_v61 = vpop.f32.mrb[12].mxu0  ;;  %v1026_v63 = vmax.f32 %v962_v57, 0.0  ;;  %v2975_v0 = vpop.f32.mrb[12].mxu1 }
 0x1b2   : > { %v2928_v62 = vpop.f32.mrb[13].mxu0  ;;  %3138 = vmatpush3.bf16.msra.mxu1 %v3434_v43  ;;  %v2976_v3 = vpop.f32.mrb[13].mxu1 }
 0x1b3   : > { %v2929_v1 = vadd.f32 %v2928_v62, %v2927_v61  ;;  %v2930_v2 = vpop.f32.mrb[14].mxu0  ;;  %v1039_v56 = vpack.c.bf16 %v1010_v60, %v1009_v59  ;;  %3139 = vmatprep.subr.bf16.mxu1 %v3435_v54  ;;  %v2977_v6 = vadd.f32 %v2976_v3, %v2975_v0  ;;  %v2978_v7 = vpop.f32.mrb[14].mxu1  ;;  %v4262_v8 = vpack.c.bf16 %v1026_v63, %v1025_v55 }
 0x1b4   : > { %v2931_v5 = vpop.f32.mrb[15].mxu0  ;;  %v2979_v11 = vpop.f32.mrb[15].mxu1 }
 0x1b5   : > { %v903_v9 = vadd.f32 %v2929_v1, %v4234_v58  ;;  %v2932_v10 = vadd.f32 %v2931_v5, %v2930_v2  ;;  %3107 = vmatprep.mubr.bf16.mxu1 %v1039_v56  ;;  %v967_v12 = vadd.f32 %v2977_v6, %v4234_v58  ;;  %v2980_v13 = vadd.f32 %v2979_v11, %v2978_v7 }
 0x1b6   : > { %3140 = vmatpush3.bf16.msra.mxu1 %v3435_v54 }
 0x1b7   : > { %v906_v14 = vadd.f32 %v2932_v10, %v4234_v58  ;;  %3141 = vmatprep.subr.bf16.mxu1 %v3436_v4  ;;  %v1027_v15 = vmax.f32 %v967_v12, 0.0  ;;  %v970_v16 = vadd.f32 %v2980_v13, %v4234_v58  ;;  %v1011_v17 = vmax.f32 %v903_v9, 0.0 }
 0x1b9   : > { %v1012_v18 = vmax.f32 %v906_v14, 0.0  ;;  %v2933_v19 = vpop.f32.mrb[16].mxu0  ;;  %v1028_v21 = vmax.f32 %v970_v16, 0.0  ;;  %v2981_v22 = vpop.f32.mrb[16].mxu1 }
 0x1ba   : > { %v2934_v20 = vpop.f32.mrb[17].mxu0  ;;  %3142 = vmatpush3.bf16.msra.mxu1 %v3436_v4  ;;  %v2982_v27 = vpop.f32.mrb[17].mxu1 }
 0x1bb   : > { %v2935_v23 = vadd.f32 %v2934_v20, %v2933_v19  ;;  %v2936_v25 = vpop.f32.mrb[18].mxu0  ;;  %v1040_v26 = vpack.c.bf16 %v1012_v18, %v1011_v17  ;;  %v2983_v29 = vadd.f32 %v2982_v27, %v2981_v22  ;;  %v2984_v30 = vpop.f32.mrb[18].mxu1  ;;  %v4268_v31 = vpack.c.bf16 %v1028_v21, %v1027_v15 }
 0x1bc   : > { %v2937_v28 = vpop.f32.mrb[19].mxu0  ;;  %v2985_v34 = vpop.f32.mrb[19].mxu1 }
 0x1bd   : > { %v911_v32 = vadd.f32 %v2935_v23, %v4234_v58  ;;  %v2938_v33 = vadd.f32 %v2937_v28, %v2936_v25  ;;  %3108 = vmatmul.mubr.bf16.gmra.mrb[36].mxu1 %v1040_v26  ;;  %v975_v35 = vadd.f32 %v2983_v29, %v4234_v58  ;;  %v2986_v36 = vadd.f32 %v2985_v34, %v2984_v30 }
 0x1bf   : > { %v914_v37 = vadd.f32 %v2938_v33, %v4234_v58  ;;  %v1029_v38 = vmax.f32 %v975_v35, 0.0  ;;  %v978_v39 = vadd.f32 %v2986_v36, %v4234_v58  ;;  %v1013_v40 = vmax.f32 %v911_v32, 0.0 }
 0x1c1   : > { %v1014_v41 = vmax.f32 %v914_v37, 0.0  ;;  %v2939_v42 = vpop.f32.mrb[20].mxu0  ;;  %v1030_v44 = vmax.f32 %v978_v39, 0.0  ;;  %v2987_v45 = vpop.f32.mrb[20].mxu1 }
 0x1c2   : > { %v2940_v43 = vpop.f32.mrb[21].mxu0  ;;  %v2988_v50 = vpop.f32.mrb[21].mxu1 }
 0x1c3   : > { %v2941_v46 = vadd.f32 %v2940_v43, %v2939_v42  ;;  %v2942_v48 = vpop.f32.mrb[22].mxu0  ;;  %v1041_v49 = vpack.c.bf16 %v1014_v41, %v1013_v40  ;;  %v2989_v52 = vadd.f32 %v2988_v50, %v2987_v45  ;;  %v2990_v53 = vpop.f32.mrb[22].mxu1  ;;  %v4274_v54 = vpack.c.bf16 %v1030_v44, %v1029_v38 }
 0x1c4   : > { %v2943_v51 = vpop.f32.mrb[23].mxu0  ;;  %v2991_v59 = vpop.f32.mrb[23].mxu1 }
 0x1c5   : > { %v919_v55 = vadd.f32 %v2941_v46, %v4234_v58  ;;  %v2944_v57 = vadd.f32 %v2943_v51, %v2942_v48  ;;  %3111 = vmatprep.mubr.bf16.mxu1 %v1041_v49  ;;  %v983_v60 = vadd.f32 %v2989_v52, %v4234_v58  ;;  %v2992_v61 = vadd.f32 %v2991_v59, %v2990_v53  ;;  %v3438_v53 = vld [vmem:[#allocation8 + $0x8] sm:$0xff]  }
 0x1c7   : > { %v922_v62 = vadd.f32 %v2944_v57, %v4234_v58  ;;  %v1031_v63 = vmax.f32 %v983_v60, 0.0  ;;  %v986_v0 = vadd.f32 %v2992_v61, %v4234_v58  ;;  %v1015_v1 = vmax.f32 %v919_v55, 0.0  ;;  %v4293_v55 = vld [vmem:[#allocation7] ss:$0 sm:$0xff] }
 0x1c9   : > { %v1016_v2 = vmax.f32 %v922_v62, 0.0  ;;  %v2945_v56 = vpop.f32.mrb[24].mxu0  ;;  %v1032_v4 = vmax.f32 %v986_v0, 0.0  ;;  %v2993_v5 = vpop.f32.mrb[24].mxu1 }
 0x1ca   : > { %v2946_v3 = vpop.f32.mrb[25].mxu0  ;;  %v2994_v10 = vpop.f32.mrb[25].mxu1 }
 0x1cb   : > { %v2947_v6 = vadd.f32 %v2946_v3, %v2945_v56  ;;  %v2948_v7 = vpop.f32.mrb[26].mxu0  ;;  %v1042_v9 = vpack.c.bf16 %v1016_v2, %v1015_v1  ;;  %v1050_v12 = vpack.c.bf16 %v1032_v4, %v1031_v63  ;;  %v2995_v13 = vadd.f32 %v2994_v10, %v2993_v5  ;;  %v2996_v14 = vpop.f32.mrb[26].mxu1 }
 0x1cc   : > { %v2949_v11 = vpop.f32.mrb[27].mxu0  ;;  %v2997_v17 = vpop.f32.mrb[27].mxu1 }
 0x1cd   : > { %v927_v15 = vadd.f32 %v2947_v6, %v4234_v58  ;;  %v2950_v16 = vadd.f32 %v2949_v11, %v2948_v7  ;;  %3112 = vmatmul.mubr.bf16.gmra.mrb[40].mxu1 %v1042_v9  ;;  %v991_v18 = vadd.f32 %v2995_v13, %v4234_v58  ;;  %v2998_v19 = vadd.f32 %v2997_v17, %v2996_v14 }
 0x1cf   : > { %v930_v20 = vadd.f32 %v2950_v16, %v4234_v58  ;;  %v1033_v21 = vmax.f32 %v991_v18, 0.0  ;;  %v994_v22 = vadd.f32 %v2998_v19, %v4234_v58  ;;  %v1017_v23 = vmax.f32 %v927_v15, 0.0 }
 0x1d1   : > { %v1018_v25 = vmax.f32 %v930_v20, 0.0  ;;  %v2951_v26 = vpop.f32.mrb[28].mxu0  ;;  %v1034_v28 = vmax.f32 %v994_v22, 0.0  ;;  %v2999_v29 = vpop.f32.mrb[28].mxu1 }
 0x1d2   : > { %v2952_v27 = vpop.f32.mrb[29].mxu0  ;;  %v3000_v34 = vpop.f32.mrb[29].mxu1 }
 0x1d3   : > { %v2953_v30 = vadd.f32 %v2952_v27, %v2951_v26  ;;  %v2954_v32 = vpop.f32.mrb[30].mxu0  ;;  %v1043_v33 = vpack.c.bf16 %v1018_v25, %v1017_v23  ;;  %v3001_v36 = vadd.f32 %v3000_v34, %v2999_v29  ;;  %v3002_v37 = vpop.f32.mrb[30].mxu1  ;;  %v1051_v38 = vpack.c.bf16 %v1034_v28, %v1033_v21 }
 0x1d4   : > { %v2955_v35 = vpop.f32.mrb[31].mxu0  ;;  %v3003_v41 = vpop.f32.mrb[31].mxu1 }
 0x1d5   : > { %v935_v39 = vadd.f32 %v2953_v30, %v4234_v58  ;;  %v2956_v40 = vadd.f32 %v2955_v35, %v2954_v32  ;;  %3115 = vmatprep.mubr.bf16.mxu1 %v1043_v33  ;;  %v999_v42 = vadd.f32 %v3001_v36, %v4234_v58  ;;  %v3004_v43 = vadd.f32 %v3003_v41, %v3002_v37 }
 0x1d7   : > { %v938_v44 = vadd.f32 %v2956_v40, %v4234_v58  ;;  %v1035_v45 = vmax.f32 %v999_v42, 0.0  ;;  %v1002_v46 = vadd.f32 %v3004_v43, %v4234_v58  ;;  %v1019_v48 = vmax.f32 %v935_v39, 0.0  ;;  %v3437_v58 = vld [vmem:[#allocation8] sm:$0xff]  }
 0x1d8   : > { %3175 = vmatprep.subr.bf16.mxu0 %v3437_v58 }
 0x1d9   : > { %v1020_v49 = vmax.f32 %v938_v44, 0.0  ;;  %v1036_v50 = vmax.f32 %v1002_v46, 0.0  ;;  %3176 = vmatpush3.bf16.msra.mxu0 %v3437_v58 }
 0x1da   : > { %3177 = vmatprep.subr.bf16.mxu0 %v3438_v53 }
 0x1db   : > { %v1044_v51 = vpack.c.bf16 %v1020_v49, %v1019_v48  ;;  %v1052_v52 = vpack.c.bf16 %v1036_v50, %v1035_v45 }
 0x1dd   : > { %3116 = vmatmul.mubr.bf16.gmra.mrb[44].mxu1 %v1044_v51  ;;  %3178 = vmatpush3.bf16.msra.mxu0 %v3438_v53 }
 0x1de   : > { %3119 = vmatprep.mubr.bf16.mxu1 %v4240_v24 }
 0x1e5   : > { %3120 = vmatmul.mubr.bf16.gmra.mrb[48].mxu1 %v4249_v47 }
 0x1e6   : > { %3123 = vmatprep.mubr.bf16.mxu1 %v4262_v8 }
 0x1ed   : > { %3124 = vmatmul.mubr.bf16.gmra.mrb[52].mxu1 %v4268_v31 }
 0x1ee   : > { %3127 = vmatprep.mubr.bf16.mxu1 %v4274_v54 }
 0x1f5   : > { %3128 = vmatmul.mubr.bf16.gmra.mrb[56].mxu1 %v1050_v12 }
 0x1f6   : > { %3131 = vmatprep.mubr.bf16.mxu1 %v1051_v38 }
 0x1fd   : > { %3132 = vmatmul.mubr.bf16.gmra.mrb[60].mxu1 %v1052_v52 }
 0x280   : > { %v3105_v24 = vpop.f32.mrb[32].mxu1 }
 0x281   : > { %v1167_v47 = vadd.f32 %v3105_v24, %v4293_v55  ;;  %v1158_v57 = vpop.f32.mrb[33].mxu1 }
 0x282   : > { %v1159_v8 = vadd.f32 %v4293_v55, %v1158_v57  ;;  %v3106_v31 = vpop.f32.mrb[34].mxu1 }
 0x283   : > { %v1170_v54 = vadd.f32 %v3106_v31, %v4293_v55  ;;  %v1161_v59 = vpop.f32.mrb[35].mxu1  ;;  %v1287_v61 = vmax.f32 %v1167_v47, 0.0 }
 0x284   : > { %v1162_v60 = vadd.f32 %v4293_v55, %v1161_v59  ;;  %v1285_v63 = vmax.f32 %v1159_v8, 0.0 }
 0x285   : > { %v1288_v62 = vmax.f32 %v1170_v54, 0.0 }
 0x286   : > { %v1286_v0 = vmax.f32 %v1162_v60, 0.0 }
 0x287   : > { %v1318_v1 = vpack.c.bf16 %v1288_v62, %v1287_v61 }
 0x288   : > { %v1317_v2 = vpack.c.bf16 %v1286_v0, %v1285_v63 }
 0x28a   : > { %3143 = vmatprep.mubr.msk.bf16.mxu1 %vm1372_vm0, %v1317_v2 }
 0x28b   : > { %3144 = vmatmul.mubr.msk.bf16.vlgmr.msra.gmra.mrb[64].mxu1 %vm1372_vm0, %v1318_v1 }
 0x290   : > { %v3109_v56 = vpop.f32.mrb[36].mxu1 }
 0x291   : > { %v1183_v3 = vadd.f32 %v3109_v56, %v4293_v55  ;;  %v1174_v4 = vpop.f32.mrb[37].mxu1 }
 0x292   : > { %v1175_v5 = vadd.f32 %v4293_v55, %v1174_v4  ;;  %v3110_v6 = vpop.f32.mrb[38].mxu1 }
 0x293   : > { %v1186_v7 = vadd.f32 %v3110_v6, %v4293_v55  ;;  %v1177_v9 = vpop.f32.mrb[39].mxu1  ;;  %v1291_v11 = vmax.f32 %v1183_v3, 0.0 }
 0x294   : > { %v1178_v10 = vadd.f32 %v4293_v55, %v1177_v9  ;;  %v1289_v13 = vmax.f32 %v1175_v5, 0.0 }
 0x295   : > { %v1292_v12 = vmax.f32 %v1186_v7, 0.0 }
 0x296   : > { %v1290_v14 = vmax.f32 %v1178_v10, 0.0 }
 0x297   : > { %v1320_v15 = vpack.c.bf16 %v1292_v12, %v1291_v11 }
 0x298   : > { %v1319_v16 = vpack.c.bf16 %v1290_v14, %v1289_v13 }
 0x29a   : > { %3147 = vmatprep.mubr.msk.bf16.mxu1 %vm1372_vm0, %v1319_v16 }
 0x29b   : > { %3148 = vmatmul.mubr.msk.bf16.gmra.mrb[68].mxu1 %vm1372_vm0, %v1320_v15 }
 0x2a0   : > { %v3113_v17 = vpop.f32.mrb[40].mxu1 }
 0x2a1   : > { %v1199_v18 = vadd.f32 %v3113_v17, %v4293_v55  ;;  %v1190_v19 = vpop.f32.mrb[41].mxu1 }
 0x2a2   : > { %v1191_v20 = vadd.f32 %v4293_v55, %v1190_v19  ;;  %v3114_v21 = vpop.f32.mrb[42].mxu1 }
 0x2a3   : > { %v1202_v22 = vadd.f32 %v3114_v21, %v4293_v55  ;;  %v1193_v23 = vpop.f32.mrb[43].mxu1  ;;  %v1295_v26 = vmax.f32 %v1199_v18, 0.0 }
 0x2a4   : > { %v1194_v25 = vadd.f32 %v4293_v55, %v1193_v23  ;;  %v1293_v28 = vmax.f32 %v1191_v20, 0.0 }
 0x2a5   : > { %v1296_v27 = vmax.f32 %v1202_v22, 0.0 }
 0x2a6   : > { %v1294_v29 = vmax.f32 %v1194_v25, 0.0 }
 0x2a7   : > { %v1322_v30 = vpack.c.bf16 %v1296_v27, %v1295_v26 }
 0x2a8   : > { %v1321_v32 = vpack.c.bf16 %v1294_v29, %v1293_v28 }
 0x2aa   : > { %3151 = vmatprep.mubr.msk.bf16.mxu1 %vm1372_vm0, %v1321_v32 }
 0x2ab   : > { %3152 = vmatmul.mubr.msk.bf16.gmra.mrb[72].mxu1 %vm1372_vm0, %v1322_v30 }
 0x2b0   : > { %v3117_v33 = vpop.f32.mrb[44].mxu1 }
 0x2b1   : > { %v1215_v34 = vadd.f32 %v3117_v33, %v4293_v55  ;;  %v1206_v35 = vpop.f32.mrb[45].mxu1 }
 0x2b2   : > { %v1207_v36 = vadd.f32 %v4293_v55, %v1206_v35  ;;  %v3118_v37 = vpop.f32.mrb[46].mxu1 }
 0x2b3   : > { %v1218_v38 = vadd.f32 %v3118_v37, %v4293_v55  ;;  %v1209_v39 = vpop.f32.mrb[47].mxu1  ;;  %v1299_v41 = vmax.f32 %v1215_v34, 0.0 }
 0x2b4   : > { %v1210_v40 = vadd.f32 %v4293_v55, %v1209_v39  ;;  %v1297_v43 = vmax.f32 %v1207_v36, 0.0 }
 0x2b5   : > { %v1300_v42 = vmax.f32 %v1218_v38, 0.0 }
 0x2b6   : > { %v1298_v44 = vmax.f32 %v1210_v40, 0.0  ;;  %v3439_v40 = vld [vmem:[%s4712_s9] sm:$0xff]  }
 0x2b7   : > { %v1324_v45 = vpack.c.bf16 %v1300_v42, %v1299_v41  ;;  %v3440_v41 = vld [vmem:[%s4712_s9 + $0x8] sm:$0xff]   ;;  %3211 = vmatprep.subr.bf16.mxu1 %v3439_v40  ;;  %v3442_v42 = vld [vmem:[%s4712_s9 + $0x18] sm:$0xff]  }
 0x2b8   : > { %v1323_v46 = vpack.c.bf16 %v1298_v44, %v1297_v43  ;;  %v3121_v48 = vpop.f32.mrb[48].mxu1  ;;  %3212 = vmatpush3.bf16.msra.mxu1 %v3439_v40  ;;  %v4358_v44 = vld [vmem:[%s4709_s6] ss:$0 sm:$0xff] }
 0x2b9   : > { %v1231_v49 = vadd.f32 %v3121_v48, %v4293_v55  ;;  %v1222_v50 = vpop.f32.mrb[49].mxu1  ;;  %3213 = vmatprep.subr.bf16.mxu1 %v3440_v41 }
 0x2ba   : > { %v1223_v51 = vadd.f32 %v4293_v55, %v1222_v50  ;;  %v3122_v52 = vpop.f32.mrb[50].mxu1  ;;  %3155 = vmatprep.mubr.msk.bf16.mxu1 %vm1372_vm0, %v1323_v46 }
 0x2bb   : > { %v1303_v58 = vmax.f32 %v1231_v49, 0.0  ;;  %v1234_v53 = vadd.f32 %v3122_v52, %v4293_v55  ;;  %v1225_v24 = vpop.f32.mrb[51].mxu1  ;;  %3156 = vmatmul.mubr.msk.bf16.gmra.mrb[76].mxu1 %vm1372_vm0, %v1324_v45 }
 0x2bc   : > { %v1301_v47 = vmax.f32 %v1223_v51, 0.0  ;;  %v1226_v57 = vadd.f32 %v4293_v55, %v1225_v24  ;;  %3214 = vmatpush3.bf16.msra.mxu1 %v3440_v41 }
 0x2bd   : > { %v1304_v8 = vmax.f32 %v1234_v53, 0.0 }
 0x2be   : > { %v1302_v31 = vmax.f32 %v1226_v57, 0.0 }
 0x2bf   : > { %v1326_v54 = vpack.c.bf16 %v1304_v8, %v1303_v58 }
 0x2c0   : > { %v1325_v59 = vpack.c.bf16 %v1302_v31, %v1301_v47  ;;  %v3125_v60 = vpop.f32.mrb[52].mxu1 }
 0x2c1   : > { %v1247_v61 = vadd.f32 %v3125_v60, %v4293_v55  ;;  %v1238_v62 = vpop.f32.mrb[53].mxu1 }
 0x2c2   : > { %v1239_v63 = vadd.f32 %v4293_v55, %v1238_v62  ;;  %v3126_v0 = vpop.f32.mrb[54].mxu1  ;;  %3159 = vmatprep.mubr.msk.bf16.mxu1 %vm1372_vm0, %v1325_v59 }
 0x2c3   : > { %v1307_v1 = vmax.f32 %v1247_v61, 0.0  ;;  %v1250_v2 = vadd.f32 %v3126_v0, %v4293_v55  ;;  %v1241_v56 = vpop.f32.mrb[55].mxu1  ;;  %3160 = vmatmul.mubr.msk.bf16.gmra.mrb[80].mxu1 %vm1372_vm0, %v1326_v54 }
 0x2c4   : > { %v1305_v3 = vmax.f32 %v1239_v63, 0.0  ;;  %v1242_v4 = vadd.f32 %v4293_v55, %v1241_v56 }
 0x2c5   : > { %v1308_v5 = vmax.f32 %v1250_v2, 0.0 }
 0x2c6   : > { %v1306_v6 = vmax.f32 %v1242_v4, 0.0 }
 0x2c7   : > { %v1328_v7 = vpack.c.bf16 %v1308_v5, %v1307_v1 }
 0x2c8   : > { %v1327_v9 = vpack.c.bf16 %v1306_v6, %v1305_v3  ;;  %v3129_v10 = vpop.f32.mrb[56].mxu1 }
 0x2c9   : > { %v1263_v11 = vadd.f32 %v3129_v10, %v4293_v55  ;;  %v1254_v12 = vpop.f32.mrb[57].mxu1 }
 0x2ca   : > { %3163 = vmatprep.mubr.msk.bf16.mxu1 %vm1372_vm0, %v1327_v9  ;;  %v1255_v13 = vadd.f32 %v4293_v55, %v1254_v12  ;;  %v3130_v14 = vpop.f32.mrb[58].mxu1 }
 0x2cb   : > { %3164 = vmatmul.mubr.msk.bf16.gmra.mrb[84].mxu1 %vm1372_vm0, %v1328_v7  ;;  %v1311_v15 = vmax.f32 %v1263_v11, 0.0  ;;  %v1266_v16 = vadd.f32 %v3130_v14, %v4293_v55  ;;  %v1257_v17 = vpop.f32.mrb[59].mxu1 }
 0x2cc   : > { %v1309_v18 = vmax.f32 %v1255_v13, 0.0  ;;  %v1258_v19 = vadd.f32 %v4293_v55, %v1257_v17 }
 0x2cd   : > { %v1312_v20 = vmax.f32 %v1266_v16, 0.0 }
 0x2ce   : > { %v1310_v21 = vmax.f32 %v1258_v19, 0.0 }
 0x2cf   : > { %v1330_v22 = vpack.c.bf16 %v1312_v20, %v1311_v15 }
 0x2d0   : > { %v1329_v23 = vpack.c.bf16 %v1310_v21, %v1309_v18  ;;  %v3133_v25 = vpop.f32.mrb[60].mxu1 }
 0x2d1   : > { %v1279_v26 = vadd.f32 %v3133_v25, %v4293_v55  ;;  %v1270_v27 = vpop.f32.mrb[61].mxu1 }
 0x2d2   : > { %3167 = vmatprep.mubr.msk.bf16.mxu1 %vm1372_vm0, %v1329_v23  ;;  %v1271_v28 = vadd.f32 %v4293_v55, %v1270_v27  ;;  %v3134_v29 = vpop.f32.mrb[62].mxu1 }
 0x2d3   : > { %3168 = vmatmul.mubr.msk.bf16.gmra.mrb[88].mxu1 %vm1372_vm0, %v1330_v22  ;;  %v1315_v30 = vmax.f32 %v1279_v26, 0.0  ;;  %v1282_v32 = vadd.f32 %v3134_v29, %v4293_v55  ;;  %v1273_v33 = vpop.f32.mrb[63].mxu1 }
 0x2d4   : > { %v1313_v34 = vmax.f32 %v1271_v28, 0.0  ;;  %v1274_v35 = vadd.f32 %v4293_v55, %v1273_v33  ;;  %v3441_v55 = vld [vmem:[%s4712_s9 + $0x10] sm:$0xff]  }
 0x2d5   : > { %v1316_v36 = vmax.f32 %v1282_v32, 0.0  ;;  %3215 = vmatprep.subr.bf16.mxu1 %v3441_v55 }
 0x2d6   : > { %v1314_v37 = vmax.f32 %v1274_v35, 0.0  ;;  %3216 = vmatpush3.bf16.msra.mxu1 %v3441_v55 }
 0x2d7   : > { %v1332_v38 = vpack.c.bf16 %v1316_v36, %v1315_v30  ;;  %3217 = vmatprep.subr.bf16.mxu1 %v3442_v42 }
 0x2d8   : > { %v1331_v39 = vpack.c.bf16 %v1314_v37, %v1313_v34 }
 0x2da   : > { %3171 = vmatprep.mubr.msk.bf16.mxu1 %vm1372_vm0, %v1331_v39  ;;  %3218 = vmatpush3.bf16.msra.mxu1 %v3442_v42 }
 0x2db   : > { %3172 = vmatmul.mubr.msk.bf16.gmra.mrb[92].mxu1 %vm1372_vm0, %v1332_v38 }
 0x35e   : > { %v3145_v43 = vpop.f32.mrb[64].mxu1 }
 0x35f   : > { %v1455_v45 = vpop.f32.mrb[65].mxu1  ;;  %v1464_v48 = vadd.f32 %v3145_v43, %v4358_v44 }
 0x360   : > { %v3146_v46 = vpop.f32.mrb[66].mxu1  ;;  %v1456_v51 = vadd.f32 %v4358_v44, %v1455_v45 }
 0x361   : > { %v1467_v49 = vadd.f32 %v3146_v46, %v4358_v44  ;;  %v1458_v50 = vpop.f32.mrb[67].mxu1 }
 0x362   : > { %v1459_v52 = vadd.f32 %v4358_v44, %v1458_v50 }
 0x363   : > { %v1583_v58 = vpack.c.bf16 %v1467_v49, %v1464_v48 }
 0x364   : > { %v1582_v53 = vpack.c.bf16 %v1459_v52, %v1456_v51 }
 0x366   : > { %3179 = vmatprep.mubr.msk.bf16.mxu0 %vm1621_vm1, %v1582_v53 }
 0x367   : > { %3180 = vmatmul.mubr.msk.bf16.vlgmr.msra.gmra.mrb[32].mxu0 %vm1621_vm1, %v1583_v58 }
 0x36e   : > { %v3149_v24 = vpop.f32.mrb[68].mxu1 }
 0x36f   : > { %v1471_v47 = vpop.f32.mrb[69].mxu1  ;;  %v1480_v8 = vadd.f32 %v3149_v24, %v4358_v44 }
 0x370   : > { %v3150_v57 = vpop.f32.mrb[70].mxu1  ;;  %v1472_v59 = vadd.f32 %v4358_v44, %v1471_v47 }
 0x371   : > { %v1483_v31 = vadd.f32 %v3150_v57, %v4358_v44  ;;  %v1474_v54 = vpop.f32.mrb[71].mxu1 }
 0x372   : > { %v1475_v60 = vadd.f32 %v4358_v44, %v1474_v54 }
 0x373   : > { %v1585_v61 = vpack.c.bf16 %v1483_v31, %v1480_v8 }
 0x374   : > { %v1584_v62 = vpack.c.bf16 %v1475_v60, %v1472_v59  ;;  %v3443_v60 = vld [vmem:[#allocation10] ss:$8 sps:$4 sm:$0xff]  }
 0x376   : > { %3183 = vmatprep.mubr.msk.bf16.mxu0 %vm1621_vm1, %v1584_v62  ;;  %v3448_v62 = vld [vmem:[#allocation10 + $0x14] ss:$8 sps:$4 sm:$0xff]  }
 0x377   : > { %3184 = vmatmul.mubr.msk.bf16.gmra.mrb[36].mxu0 %vm1621_vm1, %v1585_v61  ;;  %v3445_v61 = vld [vmem:[#allocation10 + $0x4] ss:$8 sps:$4 sm:$0xff]  }
 0x378   : > { %2283 = vmatprep.subr.bf16.mxu0 %v3445_v61 }
 0x379   : > { %2284 = vmatpush1.bf16.msra.mxu0 %v3443_v60 }
 0x37a   : > { %2285 = vmatprep.subr.bf16.mxu0 %v3448_v62 }
 0x37e   : > { %v3153_v63 = vpop.f32.mrb[72].mxu1 }
 0x37f   : > { %v1487_v0 = vpop.f32.mrb[73].mxu1  ;;  %v1496_v2 = vadd.f32 %v3153_v63, %v4358_v44  ;;  %v3446_v63 = vld [vmem:[#allocation10 + $0x10] ss:$8 sps:$4 sm:$0xff]  }
 0x380   : > { %v3154_v1 = vpop.f32.mrb[74].mxu1  ;;  %v1488_v4 = vadd.f32 %v4358_v44, %v1487_v0  ;;  %v3451_v0 = vld [vmem:[#allocation10 + $0x24] ss:$8 sps:$4 sm:$0xff]   ;;  %2286 = vmatpush1.bf16.msra.mxu0 %v3446_v63 }
 0x381   : > { %v1499_v56 = vadd.f32 %v3154_v1, %v4358_v44  ;;  %v1490_v3 = vpop.f32.mrb[75].mxu1  ;;  %v3449_v1 = vld [vmem:[#allocation10 + $0x20] ss:$8 sps:$4 sm:$0xff]   ;;  %2287 = vmatprep.subr.bf16.mxu0 %v3451_v0 }
 0x382   : > { %v1491_v5 = vadd.f32 %v4358_v44, %v1490_v3  ;;  %v3455_v3 = vld [vmem:[#allocation10 + $0x40] ss:$8 sps:$4 sm:$0xff]  }
 0x383   : > { %v1587_v6 = vpack.c.bf16 %v1499_v56, %v1496_v2  ;;  %v3454_v2 = vld [vmem:[#allocation10 + $0x34] ss:$8 sps:$4 sm:$0xff]   ;;  %v3457_v56 = vld [vmem:[#allocation10 + $0x44] ss:$8 sps:$4 sm:$0xff]  }
 0x384   : > { %v1586_v7 = vpack.c.bf16 %v1491_v5, %v1488_v4  ;;  %2288 = vmatpush1.bf16.msra.mxu0 %v3449_v1  ;;  %v3460_v4 = vld [vmem:[#allocation10 + $0x54] ss:$8 sps:$4 sm:$0xff]   ;;  %v3458_v5 = vld [vmem:[#allocation10 + $0x50] ss:$8 sps:$4 sm:$0xff]  }
 0x385   : > { %2289 = vmatprep.subr.bf16.mxu0 %v3454_v2 }
 0x386   : > { %3187 = vmatprep.mubr.msk.bf16.mxu0 %vm1621_vm1, %v1586_v7  ;;  %v3461_v7 = vld [vmem:[#allocation10 + $0x60] ss:$8 sps:$4 sm:$0xff]  }
 0x387   : > { %3188 = vmatmul.mubr.msk.bf16.gmra.mrb[40].mxu0 %vm1621_vm1, %v1587_v6  ;;  %v3463_v6 = vld [vmem:[#allocation10 + $0x64] ss:$8 sps:$4 sm:$0xff]  }
 0x38e   : > { %v3157_v9 = vpop.f32.mrb[76].mxu1 }
 0x38f   : > { %v1503_v10 = vpop.f32.mrb[77].mxu1  ;;  %v1512_v12 = vadd.f32 %v3157_v9, %v4358_v44  ;;  %v4411_v9 = vld [vmem:[%s4711_s8] ss:$0 sm:$0xff] }
 0x390   : > { %v3158_v11 = vpop.f32.mrb[78].mxu1  ;;  %v1504_v15 = vadd.f32 %v4358_v44, %v1503_v10 }
 0x391   : > { %v1515_v13 = vadd.f32 %v3158_v11, %v4358_v44  ;;  %v1506_v14 = vpop.f32.mrb[79].mxu1 }
 0x392   : > { %v1507_v16 = vadd.f32 %v4358_v44, %v1506_v14 }
 0x393   : > { %v1589_v17 = vpack.c.bf16 %v1515_v13, %v1512_v12 }
 0x394   : > { %v1588_v18 = vpack.c.bf16 %v1507_v16, %v1504_v15 }
 0x396   : > { %v3161_v19 = vpop.f32.mrb[80].mxu1  ;;  %3191 = vmatprep.mubr.msk.bf16.mxu0 %vm1621_vm1, %v1588_v18 }
 0x397   : > { %v1528_v20 = vadd.f32 %v3161_v19, %v4358_v44  ;;  %v1519_v21 = vpop.f32.mrb[81].mxu1  ;;  %3192 = vmatmul.mubr.msk.bf16.gmra.mrb[44].mxu0 %vm1621_vm1, %v1589_v17 }
 0x398   : > { %v3162_v22 = vpop.f32.mrb[82].mxu1  ;;  %v1520_v26 = vadd.f32 %v4358_v44, %v1519_v21 }
 0x399   : > { %v1531_v23 = vadd.f32 %v3162_v22, %v4358_v44  ;;  %v1522_v25 = vpop.f32.mrb[83].mxu1 }
 0x39a   : > { %v1523_v27 = vadd.f32 %v4358_v44, %v1522_v25 }
 0x39b   : > { %v1591_v28 = vpack.c.bf16 %v1531_v23, %v1528_v20 }
 0x39c   : > { %v1590_v29 = vpack.c.bf16 %v1523_v27, %v1520_v26 }
 0x39e   : > { %v3165_v30 = vpop.f32.mrb[84].mxu1  ;;  %3195 = vmatprep.mubr.msk.bf16.mxu0 %vm1621_vm1, %v1590_v29 }
 0x39f   : > { %v1544_v32 = vadd.f32 %v3165_v30, %v4358_v44  ;;  %v1535_v33 = vpop.f32.mrb[85].mxu1  ;;  %3196 = vmatmul.mubr.msk.bf16.gmra.mrb[48].mxu0 %vm1621_vm1, %v1591_v28 }
 0x3a0   : > { %v1536_v34 = vadd.f32 %v4358_v44, %v1535_v33  ;;  %v3166_v35 = vpop.f32.mrb[86].mxu1 }
 0x3a1   : > { %v1547_v36 = vadd.f32 %v3166_v35, %v4358_v44  ;;  %v1538_v37 = vpop.f32.mrb[87].mxu1 }
 0x3a2   : > { %v1539_v38 = vadd.f32 %v4358_v44, %v1538_v37 }
 0x3a3   : > { %v1593_v39 = vpack.c.bf16 %v1547_v36, %v1544_v32 }
 0x3a4   : > { %v1592_v40 = vpack.c.bf16 %v1539_v38, %v1536_v34 }
 0x3a6   : > { %3199 = vmatprep.mubr.msk.bf16.mxu0 %vm1621_vm1, %v1592_v40  ;;  %v3169_v41 = vpop.f32.mrb[88].mxu1 }
 0x3a7   : > { %3200 = vmatmul.mubr.msk.bf16.gmra.mrb[52].mxu0 %vm1621_vm1, %v1593_v39  ;;  %v1560_v55 = vadd.f32 %v3169_v41, %v4358_v44  ;;  %v1551_v42 = vpop.f32.mrb[89].mxu1 }
 0x3a8   : > { %v1552_v43 = vadd.f32 %v4358_v44, %v1551_v42  ;;  %v3170_v45 = vpop.f32.mrb[90].mxu1 }
 0x3a9   : > { %v1563_v46 = vadd.f32 %v3170_v45, %v4358_v44  ;;  %v1554_v48 = vpop.f32.mrb[91].mxu1 }
 0x3aa   : > { %v1555_v49 = vadd.f32 %v4358_v44, %v1554_v48 }
 0x3ab   : > { %v1595_v50 = vpack.c.bf16 %v1563_v46, %v1560_v55 }
 0x3ac   : > { %v1594_v51 = vpack.c.bf16 %v1555_v49, %v1552_v43 }
 0x3ae   : > { %3203 = vmatprep.mubr.msk.bf16.mxu0 %vm1621_vm1, %v1594_v51  ;;  %v3173_v52 = vpop.f32.mrb[92].mxu1 }
 0x3af   : > { %3204 = vmatmul.mubr.msk.bf16.gmra.mrb[56].mxu0 %vm1621_vm1, %v1595_v50  ;;  %v1576_v58 = vadd.f32 %v3173_v52, %v4358_v44  ;;  %v1567_v53 = vpop.f32.mrb[93].mxu1 }
 0x3b0   : > { %v1568_v24 = vadd.f32 %v4358_v44, %v1567_v53  ;;  %v3174_v47 = vpop.f32.mrb[94].mxu1 }
 0x3b1   : > { %v1579_v57 = vadd.f32 %v3174_v47, %v4358_v44  ;;  %v1570_v8 = vpop.f32.mrb[95].mxu1 }
 0x3b2   : > { %v1571_v31 = vadd.f32 %v4358_v44, %v1570_v8  ;;  %v3452_v44 = vld [vmem:[#allocation10 + $0x30] ss:$8 sps:$4 sm:$0xff]  }
 0x3b3   : > { %v1597_v54 = vpack.c.bf16 %v1579_v57, %v1576_v58  ;;  %2290 = vmatpush1.bf16.msra.mxu0 %v3452_v44 }
 0x3b4   : > { %v1596_v59 = vpack.c.bf16 %v1571_v31, %v1568_v24  ;;  %2291 = vmatprep.subr.bf16.mxu0 %v3457_v56 }
 0x3b6   : > { %3207 = vmatprep.mubr.msk.bf16.mxu0 %vm1621_vm1, %v1596_v59 }
 0x3b7   : > { %3208 = vmatmul.mubr.msk.bf16.gmra.mrb[60].mxu0 %vm1621_vm1, %v1597_v54 }
 0x3b8   : > { %2292 = vmatpush1.bf16.msra.mxu0 %v3455_v3 }
 0x3b9   : > { %2293 = vmatprep.subr.bf16.mxu0 %v3460_v4 }
 0x3bc   : > { %2294 = vmatpush1.bf16.msra.mxu0 %v3458_v5 }
 0x3bd   : > { %2295 = vmatprep.subr.bf16.mxu0 %v3463_v6 }
 0x3c0   : > { %2296 = vmatpush1.bf16.msra.mxu0 %v3461_v7 }
 0x43a   : > { %v3181_v10 = vpop.f32.mrb[32].mxu0 }
 0x43b   : > { %v1713_v11 = vadd.f32 %v3181_v10, %v4411_v9  ;;  %v1704_v12 = vpop.f32.mrb[33].mxu0 }
 0x43c   : > { %v1705_v13 = vadd.f32 %v4411_v9, %v1704_v12  ;;  %v3182_v14 = vpop.f32.mrb[34].mxu0 }
 0x43d   : > { %v1716_v15 = vadd.f32 %v3182_v14, %v4411_v9  ;;  %v1707_v16 = vpop.f32.mrb[35].mxu0  ;;  %v1833_v18 = vmax.f32 %v1713_v11, 0.0 }
 0x43e   : > { %v1708_v17 = vadd.f32 %v4411_v9, %v1707_v16  ;;  %v1831_v20 = vmax.f32 %v1705_v13, 0.0 }
 0x43f   : > { %v1834_v19 = vmax.f32 %v1716_v15, 0.0 }
 0x440   : > { %v1832_v21 = vmax.f32 %v1708_v17, 0.0 }
 0x441   : > { %v1864_v22 = vpack.c.bf16 %v1834_v19, %v1833_v18 }
 0x442   : > { %v1863_v23 = vpack.c.bf16 %v1832_v21, %v1831_v20 }
 0x444   : > { %3219 = vmatprep.mubr.msk.bf16.mxu1 %vm1372_vm0, %v1863_v23 }
 0x445   : > { %3220 = vmatmul.mubr.msk.bf16.vlgmr.msra.gmra.mrb[96].mxu1 %vm1372_vm0, %v1864_v22 }
 0x44a   : > { %v3185_v25 = vpop.f32.mrb[36].mxu0 }
 0x44b   : > { %v1729_v26 = vadd.f32 %v3185_v25, %v4411_v9  ;;  %v1720_v27 = vpop.f32.mrb[37].mxu0 }
 0x44c   : > { %v1721_v28 = vadd.f32 %v4411_v9, %v1720_v27  ;;  %v3186_v29 = vpop.f32.mrb[38].mxu0 }
 0x44d   : > { %v1732_v30 = vadd.f32 %v3186_v29, %v4411_v9  ;;  %v1723_v32 = vpop.f32.mrb[39].mxu0  ;;  %v1837_v34 = vmax.f32 %v1729_v26, 0.0 }
 0x44e   : > { %v1724_v33 = vadd.f32 %v4411_v9, %v1723_v32  ;;  %v1835_v36 = vmax.f32 %v1721_v28, 0.0 }
 0x44f   : > { %v1838_v35 = vmax.f32 %v1732_v30, 0.0 }
 0x450   : > { %v1836_v37 = vmax.f32 %v1724_v33, 0.0 }
 0x451   : > { %v1866_v38 = vpack.c.bf16 %v1838_v35, %v1837_v34 }
 0x452   : > { %v1865_v39 = vpack.c.bf16 %v1836_v37, %v1835_v36 }
 0x454   : > { %3223 = vmatprep.mubr.msk.bf16.mxu1 %vm1372_vm0, %v1865_v39 }
 0x455   : > { %3224 = vmatmul.mubr.msk.bf16.gmra.mrb[100].mxu1 %vm1372_vm0, %v1866_v38 }
 0x45a   : > { %v3189_v40 = vpop.f32.mrb[40].mxu0 }
 0x45b   : > { %v1745_v41 = vadd.f32 %v3189_v40, %v4411_v9  ;;  %v1736_v55 = vpop.f32.mrb[41].mxu0 }
 0x45c   : > { %v1737_v42 = vadd.f32 %v4411_v9, %v1736_v55  ;;  %v3190_v43 = vpop.f32.mrb[42].mxu0 }
 0x45d   : > { %v1748_v45 = vadd.f32 %v3190_v43, %v4411_v9  ;;  %v1739_v46 = vpop.f32.mrb[43].mxu0  ;;  %v1841_v49 = vmax.f32 %v1745_v41, 0.0 }
 0x45e   : > { %v1740_v48 = vadd.f32 %v4411_v9, %v1739_v46  ;;  %v1839_v51 = vmax.f32 %v1737_v42, 0.0 }
 0x45f   : > { %v1842_v50 = vmax.f32 %v1748_v45, 0.0 }
 0x460   : > { %v1840_v52 = vmax.f32 %v1740_v48, 0.0 }
 0x461   : > { %v1868_v58 = vpack.c.bf16 %v1842_v50, %v1841_v49 }
 0x462   : > { %v1867_v53 = vpack.c.bf16 %v1840_v52, %v1839_v51 }
 0x464   : > { %3227 = vmatprep.mubr.msk.bf16.mxu1 %vm1372_vm0, %v1867_v53 }
 0x465   : > { %3228 = vmatmul.mubr.msk.bf16.gmra.mrb[104].mxu1 %vm1372_vm0, %v1868_v58 }
 0x46a   : > { %v3193_v24 = vpop.f32.mrb[44].mxu0 }
 0x46b   : > { %v1761_v47 = vadd.f32 %v3193_v24, %v4411_v9  ;;  %v1752_v57 = vpop.f32.mrb[45].mxu0 }
 0x46c   : > { %v1753_v8 = vadd.f32 %v4411_v9, %v1752_v57  ;;  %v3194_v31 = vpop.f32.mrb[46].mxu0 }
 0x46d   : > { %v1764_v54 = vadd.f32 %v3194_v31, %v4411_v9  ;;  %v1755_v59 = vpop.f32.mrb[47].mxu0  ;;  %v1845_v61 = vmax.f32 %v1761_v47, 0.0 }
 0x46e   : > { %v1756_v60 = vadd.f32 %v4411_v9, %v1755_v59  ;;  %v1843_v63 = vmax.f32 %v1753_v8, 0.0 }
 0x46f   : > { %v1846_v62 = vmax.f32 %v1764_v54, 0.0 }
 0x470   : > { %v1844_v0 = vmax.f32 %v1756_v60, 0.0  ;;  %v3464_v60 = vld [vmem:[#allocation10 + $0x70] ss:$8 sps:$4 sm:$0xff]  }
 0x471   : > { %v1870_v1 = vpack.c.bf16 %v1846_v62, %v1845_v61  ;;  %v3466_v61 = vld [vmem:[#allocation10 + $0x74] ss:$8 sps:$4 sm:$0xff]   ;;  %v3822_v62 = vmov 0  }
 0x472   : > { %v1869_v2 = vpack.c.bf16 %v1844_v0, %v1843_v63  ;;  %v3197_v44 = vpop.f32.mrb[48].mxu0  ;;  %2297 = vmatprep.subr.bf16.mxu0 %v3466_v61  ;;  %2315 = vmatprep.mubr.bf16.mxu0 %v3822_v62  ;;  %v4465_v63 = vld [vmem:[%s4746_s15] ss:$0 sm:$0xff]  ;;  %s3823_s15 = smov [#allocation11]  }
 0x473   : > { %v1777_v56 = vadd.f32 %v3197_v44, %v4411_v9  ;;  %v1768_v3 = vpop.f32.mrb[49].mxu0  ;;  %2298 = vmatpush1.bf16.msra.mxu0 %v3464_v60  ;;  %s3741_s20 = sshll.u32 %s3823_s15, 4  ;;  %s3742_s20 = int_to_ptr.vmem [resolvable:$false] %s3741_s20 }
 0x474   : > { %v1769_v4 = vadd.f32 %v4411_v9, %v1768_v3  ;;  %v3198_v5 = vpop.f32.mrb[50].mxu0  ;;  %3231 = vmatprep.mubr.msk.bf16.mxu1 %vm1372_vm0, %v1869_v2  ;;  %s3743_s10 = scalar_lea.vmem %s3742_s20, 16384  ;;  %p3744_p3 = scmp.lt.s32.totalorder %s4656_s23, %s3742_s20 }
 0x475   : > { %v1780_v6 = vadd.f32 %v3198_v5, %v4411_v9  ;;  %v1771_v7 = vpop.f32.mrb[51].mxu0  ;;  %3232 = vmatmul.mubr.msk.bf16.gmra.mrb[108].mxu1 %vm1372_vm0, %v1870_v1  ;;  %v1849_v11 = vmax.f32 %v1777_v56, 0.0  ;;  %p3745_p7 = scmp.lt.s32.totalorder %s3743_s10, %s3737_s30 }
 0x476   : > { %v1772_v10 = vadd.f32 %v4411_v9, %v1771_v7  ;;  %v1847_v13 = vmax.f32 %v1769_v4, 0.0 }
 0x477   : > { %v1850_v12 = vmax.f32 %v1780_v6, 0.0  ;;  %p3746_p10 = por %p3745_p7, %p3744_p3 }
 0x478   : > { %v1848_v14 = vmax.f32 %v1772_v10, 0.0 }
 0x479   : > { %v1872_v15 = vpack.c.bf16 %v1850_v12, %v1849_v11  ;;  %p3747_p13 = pnand %p3746_p10, %p3740_p8 }
 0x47a   : > { %v1871_v16 = vpack.c.bf16 %v1848_v14, %v1847_v13  ;;  %v3201_v17 = vpop.f32.mrb[52].mxu0 }
 0x47b   : > { %v1793_v18 = vadd.f32 %v3201_v17, %v4411_v9  ;;  %v1784_v19 = vpop.f32.mrb[53].mxu0 }
 0x47c   : > { %v1785_v20 = vadd.f32 %v4411_v9, %v1784_v19  ;;  %v3202_v21 = vpop.f32.mrb[54].mxu0  ;;  %3235 = vmatprep.mubr.msk.bf16.mxu1 %vm1372_vm0, %v1871_v16 }
 0x47d   : > { %v1853_v22 = vmax.f32 %v1793_v18, 0.0  ;;  %v1796_v23 = vadd.f32 %v3202_v21, %v4411_v9  ;;  %v1787_v25 = vpop.f32.mrb[55].mxu0  ;;  %3236 = vmatmul.mubr.msk.bf16.gmra.mrb[112].mxu1 %vm1372_vm0, %v1872_v15 }
 0x47e   : > { %v1851_v26 = vmax.f32 %v1785_v20, 0.0  ;;  %v1788_v27 = vadd.f32 %v4411_v9, %v1787_v25 }
 0x47f   : > { %v1854_v28 = vmax.f32 %v1796_v23, 0.0 }
 0x480   : > { %v1852_v29 = vmax.f32 %v1788_v27, 0.0 }
 0x481   : > { %v1874_v30 = vpack.c.bf16 %v1854_v28, %v1853_v22 }
 0x482   : > { %v1873_v32 = vpack.c.bf16 %v1852_v29, %v1851_v26  ;;  %v3205_v33 = vpop.f32.mrb[56].mxu0 }
 0x483   : > { %v1809_v34 = vadd.f32 %v3205_v33, %v4411_v9  ;;  %v1800_v35 = vpop.f32.mrb[57].mxu0 }
 0x484   : > { %3239 = vmatprep.mubr.msk.bf16.mxu1 %vm1372_vm0, %v1873_v32  ;;  %v1801_v36 = vadd.f32 %v4411_v9, %v1800_v35  ;;  %v3206_v37 = vpop.f32.mrb[58].mxu0 }
 0x485   : > { %3240 = vmatmul.mubr.msk.bf16.gmra.mrb[116].mxu1 %vm1372_vm0, %v1874_v30  ;;  %v1857_v38 = vmax.f32 %v1809_v34, 0.0  ;;  %v1812_v39 = vadd.f32 %v3206_v37, %v4411_v9  ;;  %v1803_v40 = vpop.f32.mrb[59].mxu0 }
 0x486   : > { %v1855_v41 = vmax.f32 %v1801_v36, 0.0  ;;  %v1804_v55 = vadd.f32 %v4411_v9, %v1803_v40 }
 0x487   : > { %v1858_v42 = vmax.f32 %v1812_v39, 0.0 }
 0x488   : > { %v1856_v43 = vmax.f32 %v1804_v55, 0.0 }
 0x489   : > { %v1876_v45 = vpack.c.bf16 %v1858_v42, %v1857_v38 }
 0x48a   : > { %v1875_v46 = vpack.c.bf16 %v1856_v43, %v1855_v41  ;;  %v3209_v48 = vpop.f32.mrb[60].mxu0 }
 0x48b   : > { %v1825_v49 = vadd.f32 %v3209_v48, %v4411_v9  ;;  %v1816_v50 = vpop.f32.mrb[61].mxu0 }
 0x48c   : > { %3243 = vmatprep.mubr.msk.bf16.mxu1 %vm1372_vm0, %v1875_v46  ;;  %v1817_v51 = vadd.f32 %v4411_v9, %v1816_v50  ;;  %v3210_v52 = vpop.f32.mrb[62].mxu0 }
 0x48d   : > { %3244 = vmatmul.mubr.msk.bf16.gmra.mrb[120].mxu1 %vm1372_vm0, %v1876_v45  ;;  %v1861_v58 = vmax.f32 %v1825_v49, 0.0  ;;  %v1828_v53 = vadd.f32 %v3210_v52, %v4411_v9  ;;  %v1819_v24 = vpop.f32.mrb[63].mxu0 }
 0x48e   : > { %v1859_v47 = vmax.f32 %v1817_v51, 0.0  ;;  %v1820_v57 = vadd.f32 %v4411_v9, %v1819_v24 }
 0x48f   : > { %v1862_v8 = vmax.f32 %v1828_v53, 0.0 }
 0x490   : > { %v1860_v31 = vmax.f32 %v1820_v57, 0.0 }
 0x491   : > { %v1878_v54 = vpack.c.bf16 %v1862_v8, %v1861_v58 }
 0x492   : > { %v1877_v59 = vpack.c.bf16 %v1860_v31, %v1859_v47 }
 0x494   : > { %3247 = vmatprep.mubr.msk.bf16.mxu1 %vm1372_vm0, %v1877_v59 }
 0x495   : > { %3248 = vmatmul.mubr.msk.bf16.gmra.mrb[124].mxu1 %vm1372_vm0, %v1878_v54 }
 0x518   : > { %v3221_v9 = vpop.f32.mrb[96].mxu1 }
 0x519   : > { %v2009_v0 = vadd.f32 %v3221_v9, %v4465_v63  ;;  %v2000_v1 = vpop.f32.mrb[97].mxu1 }
 0x51a   : > { %v2001_v2 = vadd.f32 %v4465_v63, %v2000_v1  ;;  %v3222_v44 = vpop.f32.mrb[98].mxu1 }
 0x51b   : > { %v2012_v56 = vadd.f32 %v3222_v44, %v4465_v63  ;;  %v2003_v3 = vpop.f32.mrb[99].mxu1  ;;  %v2129_v5 = vmax.f32 %v2009_v0, 0.0 }
 0x51c   : > { %v2004_v4 = vadd.f32 %v4465_v63, %v2003_v3  ;;  %v2127_v7 = vmax.f32 %v2001_v2, 0.0 }
 0x51d   : > { %v2130_v6 = vmax.f32 %v2012_v56, 0.0 }
 0x51e   : > { %v2128_v10 = vmax.f32 %v2004_v4, 0.0 }
 0x51f   : > { %v2160_v11 = vpack.c.bf16 %v2130_v6, %v2129_v5 }
 0x520   : > { %v2159_v12 = vpack.c.bf16 %v2128_v10, %v2127_v7 }
 0x522   : > { %2316 = vmatmul.mubr.bf16.vlgmr.msra.gmra.mrb[64].mxu0 %v2159_v12 }
 0x523   : > { %2325 = vmatprep.mubr.bf16.mxu0 %v3822_v62 }
 0x528   : > { %v3225_v13 = vpop.f32.mrb[100].mxu1 }
 0x529   : > { %v2025_v14 = vadd.f32 %v3225_v13, %v4465_v63  ;;  %v2016_v15 = vpop.f32.mrb[101].mxu1 }
 0x52a   : > { %v2017_v16 = vadd.f32 %v4465_v63, %v2016_v15  ;;  %v3226_v17 = vpop.f32.mrb[102].mxu1  ;;  %2326 = vmatmul.mubr.bf16.gmra.mrb[68].mxu0 %v2160_v11 }
 0x52b   : > { %v2028_v18 = vadd.f32 %v3226_v17, %v4465_v63  ;;  %v2019_v19 = vpop.f32.mrb[103].mxu1  ;;  %2335 = vmatprep.mubr.bf16.mxu0 %v3822_v62  ;;  %v2133_v21 = vmax.f32 %v2025_v14, 0.0 }
 0x52c   : > { %v2020_v20 = vadd.f32 %v4465_v63, %v2019_v19  ;;  %v2131_v23 = vmax.f32 %v2017_v16, 0.0 }
 0x52d   : > { %v2134_v22 = vmax.f32 %v2028_v18, 0.0 }
 0x52e   : > { %v2132_v25 = vmax.f32 %v2020_v20, 0.0 }
 0x52f   : > { %v2162_v26 = vpack.c.bf16 %v2134_v22, %v2133_v21 }
 0x530   : > { %v2161_v27 = vpack.c.bf16 %v2132_v25, %v2131_v23 }
 0x532   : > { %2336 = vmatmul.mubr.bf16.gmra.mrb[72].mxu0 %v2161_v27 }
 0x533   : > { %2345 = vmatprep.mubr.bf16.mxu0 %v3822_v62 }
 0x538   : > { %v3229_v28 = vpop.f32.mrb[104].mxu1 }
 0x539   : > { %v2041_v29 = vadd.f32 %v3229_v28, %v4465_v63  ;;  %v2032_v30 = vpop.f32.mrb[105].mxu1 }
 0x53a   : > { %v2033_v32 = vadd.f32 %v4465_v63, %v2032_v30  ;;  %v3230_v33 = vpop.f32.mrb[106].mxu1  ;;  %2346 = vmatmul.mubr.bf16.gmra.mrb[76].mxu0 %v2162_v26 }
 0x53b   : > { %v2044_v34 = vadd.f32 %v3230_v33, %v4465_v63  ;;  %v2035_v35 = vpop.f32.mrb[107].mxu1  ;;  %2355 = vmatprep.mubr.bf16.mxu0 %v3822_v62  ;;  %v2137_v37 = vmax.f32 %v2041_v29, 0.0 }
 0x53c   : > { %v2036_v36 = vadd.f32 %v4465_v63, %v2035_v35  ;;  %v2135_v39 = vmax.f32 %v2033_v32, 0.0 }
 0x53d   : > { %v2138_v38 = vmax.f32 %v2044_v34, 0.0 }
 0x53e   : > { %v2136_v40 = vmax.f32 %v2036_v36, 0.0 }
 0x53f   : > { %v2164_v41 = vpack.c.bf16 %v2138_v38, %v2137_v37 }
 0x540   : > { %v2163_v55 = vpack.c.bf16 %v2136_v40, %v2135_v39 }
 0x542   : > { %2356 = vmatmul.mubr.bf16.gmra.mrb[80].mxu0 %v2163_v55 }
 0x543   : > { %2365 = vmatprep.mubr.bf16.mxu0 %v3822_v62 }
 0x548   : > { %v3233_v42 = vpop.f32.mrb[108].mxu1 }
 0x549   : > { %v2057_v43 = vadd.f32 %v3233_v42, %v4465_v63  ;;  %v2048_v45 = vpop.f32.mrb[109].mxu1 }
 0x54a   : > { %v2049_v46 = vadd.f32 %v4465_v63, %v2048_v45  ;;  %v3234_v48 = vpop.f32.mrb[110].mxu1  ;;  %2366 = vmatmul.mubr.bf16.gmra.mrb[84].mxu0 %v2164_v41 }
 0x54b   : > { %v2060_v49 = vadd.f32 %v3234_v48, %v4465_v63  ;;  %v2051_v50 = vpop.f32.mrb[111].mxu1  ;;  %2375 = vmatprep.mubr.bf16.mxu0 %v3822_v62  ;;  %v2141_v52 = vmax.f32 %v2057_v43, 0.0 }
 0x54c   : > { %v2052_v51 = vadd.f32 %v4465_v63, %v2051_v50  ;;  %v2139_v53 = vmax.f32 %v2049_v46, 0.0 }
 0x54d   : > { %v2142_v58 = vmax.f32 %v2060_v49, 0.0 }
 0x54e   : > { %v2140_v24 = vmax.f32 %v2052_v51, 0.0 }
 0x54f   : > { %v2166_v47 = vpack.c.bf16 %v2142_v58, %v2141_v52 }
 0x550   : > { %v2165_v57 = vpack.c.bf16 %v2140_v24, %v2139_v53  ;;  %v3237_v8 = vpop.f32.mrb[112].mxu1  ;;  %v2191_v53 = vld [vmem:[%s4747_s24] sm:$0x3] }
 0x551   : > { %v2073_v31 = vadd.f32 %v3237_v8, %v4465_v63  ;;  %v2064_v54 = vpop.f32.mrb[113].mxu1 }
 0x552   : > { %v2065_v59 = vadd.f32 %v4465_v63, %v2064_v54  ;;  %v3238_v60 = vpop.f32.mrb[114].mxu1  ;;  %2376 = vmatmul.mubr.bf16.gmra.mrb[88].mxu0 %v2165_v57 }
 0x553   : > { %v2076_v61 = vadd.f32 %v3238_v60, %v4465_v63  ;;  %v2067_v9 = vpop.f32.mrb[115].mxu1  ;;  %2385 = vmatprep.mubr.bf16.mxu0 %v3822_v62  ;;  %v2145_v1 = vmax.f32 %v2073_v31, 0.0 }
 0x554   : > { %v2068_v0 = vadd.f32 %v4465_v63, %v2067_v9  ;;  %v2143_v44 = vmax.f32 %v2065_v59, 0.0 }
 0x555   : > { %v2146_v2 = vmax.f32 %v2076_v61, 0.0 }
 0x556   : > { %v2144_v56 = vmax.f32 %v2068_v0, 0.0 }
 0x557   : > { %v2168_v3 = vpack.c.bf16 %v2146_v2, %v2145_v1 }
 0x558   : > { %v2167_v4 = vpack.c.bf16 %v2144_v56, %v2143_v44  ;;  %v3241_v5 = vpop.f32.mrb[116].mxu1 }
 0x559   : > { %v2089_v6 = vadd.f32 %v3241_v5, %v4465_v63  ;;  %v2080_v7 = vpop.f32.mrb[117].mxu1 }
 0x55a   : > { %v2081_v10 = vadd.f32 %v4465_v63, %v2080_v7  ;;  %v3242_v11 = vpop.f32.mrb[118].mxu1  ;;  %2386 = vmatmul.mubr.bf16.gmra.mrb[92].mxu0 %v2166_v47 }
 0x55b   : > { %v2149_v12 = vmax.f32 %v2089_v6, 0.0  ;;  %v2092_v13 = vadd.f32 %v3242_v11, %v4465_v63  ;;  %v2083_v14 = vpop.f32.mrb[119].mxu1  ;;  %2395 = vmatprep.mubr.bf16.mxu0 %v3822_v62 }
 0x55c   : > { %v2084_v15 = vadd.f32 %v4465_v63, %v2083_v14  ;;  %v2147_v17 = vmax.f32 %v2081_v10, 0.0 }
 0x55d   : > { %v2150_v16 = vmax.f32 %v2092_v13, 0.0 }
 0x55e   : > { %v2148_v18 = vmax.f32 %v2084_v15, 0.0 }
 0x55f   : > { %v2170_v19 = vpack.c.bf16 %v2150_v16, %v2149_v12 }
 0x560   : > { %v2169_v20 = vpack.c.bf16 %v2148_v18, %v2147_v17  ;;  %v3245_v21 = vpop.f32.mrb[120].mxu1 }
 0x561   : > { %v2105_v22 = vadd.f32 %v3245_v21, %v4465_v63  ;;  %v2096_v23 = vpop.f32.mrb[121].mxu1 }
 0x562   : > { %2396 = vmatmul.mubr.bf16.gmra.mrb[96].mxu0 %v2167_v4  ;;  %v2097_v25 = vadd.f32 %v4465_v63, %v2096_v23  ;;  %v3246_v26 = vpop.f32.mrb[122].mxu1 }
 0x563   : > { %v2153_v27 = vmax.f32 %v2105_v22, 0.0  ;;  %v2108_v28 = vadd.f32 %v3246_v26, %v4465_v63  ;;  %v2099_v29 = vpop.f32.mrb[123].mxu1  ;;  %2405 = vmatprep.mubr.bf16.mxu0 %v3822_v62 }
 0x564   : > { %v2151_v30 = vmax.f32 %v2097_v25, 0.0  ;;  %v2100_v32 = vadd.f32 %v4465_v63, %v2099_v29 }
 0x565   : > { %v2154_v33 = vmax.f32 %v2108_v28, 0.0 }
 0x566   : > { %v2152_v34 = vmax.f32 %v2100_v32, 0.0 }
 0x567   : > { %v2172_v35 = vpack.c.bf16 %v2154_v33, %v2153_v27 }
 0x568   : > { %v2171_v36 = vpack.c.bf16 %v2152_v34, %v2151_v30  ;;  %v3249_v37 = vpop.f32.mrb[124].mxu1 }
 0x569   : > { %v2121_v38 = vadd.f32 %v3249_v37, %v4465_v63  ;;  %v2112_v39 = vpop.f32.mrb[125].mxu1 }
 0x56a   : > { %2406 = vmatmul.mubr.bf16.gmra.mrb[100].mxu0 %v2168_v3  ;;  %v2113_v40 = vadd.f32 %v4465_v63, %v2112_v39  ;;  %v3250_v41 = vpop.f32.mrb[126].mxu1 }
 0x56b   : > { %2415 = vmatprep.mubr.bf16.mxu0 %v3822_v62  ;;  %v2157_v55 = vmax.f32 %v2121_v38, 0.0  ;;  %v2124_v42 = vadd.f32 %v3250_v41, %v4465_v63  ;;  %v2115_v43 = vpop.f32.mrb[127].mxu1 }
 0x56c   : > { %v2155_v45 = vmax.f32 %v2113_v40, 0.0  ;;  %v2116_v46 = vadd.f32 %v4465_v63, %v2115_v43  ;;  %v2193_v63 = vlaneseq }
 0x56d   : > { %v2158_v48 = vmax.f32 %v2124_v42, 0.0 }
 0x56e   : > { %v2156_v49 = vmax.f32 %v2116_v46, 0.0  ;;  %v2194_v52 = vshrl.u32 %v2193_v63, 7 }
 0x56f   : > { %v2174_v50 = vpack.c.bf16 %v2158_v48, %v2157_v55 }
 0x570   : > { %v2173_v51 = vpack.c.bf16 %v2156_v49, %v2155_v45  ;;  %v2195_v58 = vsub.s32 0, %v2194_v52  ;;  %v2199_v24 = vsub.s32 1, %v2194_v52 }
 0x572   : > { %2416 = vmatmul.mubr.bf16.gmra.mrb[104].mxu0 %v2169_v20  ;;  %v4517_v47 = vrot.slane %v2191_v53, %v2195_v58  ;;  %v4519_v57 = vrot.slane %v2191_v53, %v2199_v24 }
 0x573   : > { %2425 = vmatprep.mubr.bf16.mxu0 %v3822_v62 }
 0x57a   : > { %2426 = vmatmul.mubr.bf16.gmra.mrb[108].mxu0 %v2170_v19 }
 0x57b   : > { %2435 = vmatprep.mubr.bf16.mxu0 %v3822_v62 }
 0x582   : > { %2436 = vmatmul.mubr.bf16.gmra.mrb[112].mxu0 %v2171_v36 }
 0x583   : > { %2445 = vmatprep.mubr.bf16.mxu0 %v3822_v62 }
 0x58a   : > { %2446 = vmatmul.mubr.bf16.gmra.mrb[116].mxu0 %v2172_v35 }
 0x58b   : > { %2455 = vmatprep.mubr.bf16.mxu0 %v3822_v62 }
 0x592   : > { %2456 = vmatmul.mubr.bf16.gmra.mrb[120].mxu0 %v2173_v51 }
 0x593   : > { %2465 = vmatprep.mubr.bf16.mxu0 %v3822_v62 }
 0x59a   : > { %2466 = vmatmul.mubr.bf16.gmra.mrb[124].mxu0 %v2174_v50 }
 0x5f5   : > { %v2317_v8 = vpop.f32.mrb[64].mxu0 }
 0x5f6   : > { %v2318_v31 = vadd.f32 %v2317_v8, %v4517_v47  ;;  %v2319_v54 = vpop.f32.mrb[65].mxu0 }
 0x5f7   : > { %v2320_v62 = vadd.f32 %v2319_v54, %v4519_v57  ;;  %v2321_v59 = vpop.f32.mrb[66].mxu0 }
 0x5f8   : > { %3467 = vtanh.f32 %v2318_v31  ;;  %v2322_v60 = vadd.f32 %v2321_v59, %v4517_v47  ;;  %v2323_v61 = vpop.f32.mrb[67].mxu0 }
 0x5f9   : > { %3469 = vtanh.f32 %v2320_v62  ;;  %v2324_v9 = vadd.f32 %v2323_v61, %v4519_v57 }
 0x5fa   : > { %3471 = vtanh.f32 %v2322_v60 }
 0x5fb   : > { %3473 = vtanh.f32 %v2324_v9 }
 0x5fd   : > { %v2327_v0 = vpop.f32.mrb[68].mxu0 }
 0x5fe   : > { %v2328_v1 = vadd.f32 %v2327_v0, %v4517_v47  ;;  %v2329_v2 = vpop.f32.mrb[69].mxu0 }
 0x5ff   : > { %v2330_v44 = vadd.f32 %v2329_v2, %v4519_v57  ;;  %v2331_v56 = vpop.f32.mrb[70].mxu0 }
 0x600   : > { %3475 = vtanh.f32 %v2328_v1  ;;  %v2332_v3 = vadd.f32 %v2331_v56, %v4517_v47  ;;  %v2333_v4 = vpop.f32.mrb[71].mxu0 }
 0x601   : > { %3477 = vtanh.f32 %v2330_v44  ;;  %v2334_v5 = vadd.f32 %v2333_v4, %v4519_v57 }
 0x602   : > { %v3468_v6 = vpop.eup %3467  ;;  %3479 = vtanh.f32 %v2332_v3 }
 0x603   : > { %v3470_v7 = vpop.eup %3469  ;;  %2540 = vst [vmem:[%s4530_s19] sm:$0xff] %v3468_v6  ;;  %3481 = vtanh.f32 %v2334_v5 }
 0x604   : > { %v3472_v10 = vpop.eup %3471  ;;  %2541 = vst [vmem:[%s4530_s19 + $0x8] sm:$0xff] %v3470_v7 }
 0x605   : > { %v3474_v11 = vpop.eup %3473  ;;  %2542 = vst [vmem:[%s4530_s19 + $0x10] sm:$0xff] %v3472_v10  ;;  %v2337_v12 = vpop.f32.mrb[72].mxu0 }
 0x606   : > { %2543 = vst [vmem:[%s4530_s19 + $0x18] sm:$0xff] %v3474_v11  ;;  %v2338_v13 = vadd.f32 %v2337_v12, %v4517_v47  ;;  %v2339_v14 = vpop.f32.mrb[73].mxu0 }
 0x607   : > { %v2340_v15 = vadd.f32 %v2339_v14, %v4519_v57  ;;  %v2341_v16 = vpop.f32.mrb[74].mxu0 }
 0x608   : > { %3483 = vtanh.f32 %v2338_v13  ;;  %v2342_v17 = vadd.f32 %v2341_v16, %v4517_v47  ;;  %v2343_v18 = vpop.f32.mrb[75].mxu0 }
 0x609   : > { %3485 = vtanh.f32 %v2340_v15  ;;  %v2344_v19 = vadd.f32 %v2343_v18, %v4519_v57 }
 0x60a   : > { %v3476_v20 = vpop.eup %3475  ;;  %3487 = vtanh.f32 %v2342_v17 }
 0x60b   : > { %v3478_v21 = vpop.eup %3477  ;;  %2544 = vst [vmem:[%s4530_s19 + $0x20] sm:$0xff] %v3476_v20  ;;  %3489 = vtanh.f32 %v2344_v19 }
 0x60c   : > { %v3480_v22 = vpop.eup %3479  ;;  %2545 = vst [vmem:[%s4530_s19 + $0x28] sm:$0xff] %v3478_v21 }
 0x60d   : > { %v3482_v23 = vpop.eup %3481  ;;  %2546 = vst [vmem:[%s4530_s19 + $0x30] sm:$0xff] %v3480_v22  ;;  %v2347_v25 = vpop.f32.mrb[76].mxu0 }
 0x60e   : > { %2547 = vst [vmem:[%s4530_s19 + $0x38] sm:$0xff] %v3482_v23  ;;  %v2348_v26 = vadd.f32 %v2347_v25, %v4517_v47  ;;  %v2349_v27 = vpop.f32.mrb[77].mxu0 }
 0x60f   : > { %v2350_v28 = vadd.f32 %v2349_v27, %v4519_v57  ;;  %v2351_v29 = vpop.f32.mrb[78].mxu0 }
 0x610   : > { %3491 = vtanh.f32 %v2348_v26  ;;  %v2352_v30 = vadd.f32 %v2351_v29, %v4517_v47  ;;  %v2353_v32 = vpop.f32.mrb[79].mxu0 }
 0x611   : > { %3493 = vtanh.f32 %v2350_v28  ;;  %v2354_v33 = vadd.f32 %v2353_v32, %v4519_v57 }
 0x612   : > { %v3484_v34 = vpop.eup %3483  ;;  %3495 = vtanh.f32 %v2352_v30 }
 0x613   : > { %v3486_v35 = vpop.eup %3485  ;;  %2548 = vst [vmem:[%s4530_s19 + $0x40] sm:$0xff] %v3484_v34  ;;  %3497 = vtanh.f32 %v2354_v33 }
 0x614   : > { %v3488_v36 = vpop.eup %3487  ;;  %2549 = vst [vmem:[%s4530_s19 + $0x48] sm:$0xff] %v3486_v35 }
 0x615   : > { %v3490_v37 = vpop.eup %3489  ;;  %2550 = vst [vmem:[%s4530_s19 + $0x50] sm:$0xff] %v3488_v36  ;;  %v2357_v38 = vpop.f32.mrb[80].mxu0 }
 0x616   : > { %2551 = vst [vmem:[%s4530_s19 + $0x58] sm:$0xff] %v3490_v37  ;;  %v2358_v39 = vadd.f32 %v2357_v38, %v4517_v47  ;;  %v2359_v40 = vpop.f32.mrb[81].mxu0 }
 0x617   : > { %v2360_v41 = vadd.f32 %v2359_v40, %v4519_v57  ;;  %v2361_v55 = vpop.f32.mrb[82].mxu0 }
 0x618   : > { %3499 = vtanh.f32 %v2358_v39  ;;  %v2362_v42 = vadd.f32 %v2361_v55, %v4517_v47  ;;  %v2363_v43 = vpop.f32.mrb[83].mxu0 }
 0x619   : > { %3501 = vtanh.f32 %v2360_v41  ;;  %v2364_v45 = vadd.f32 %v2363_v43, %v4519_v57 }
 0x61a   : > { %v3492_v46 = vpop.eup %3491  ;;  %3503 = vtanh.f32 %v2362_v42 }
 0x61b   : > { %v3494_v48 = vpop.eup %3493  ;;  %2552 = vst [vmem:[%s4530_s19 + $0x60] sm:$0xff] %v3492_v46  ;;  %3505 = vtanh.f32 %v2364_v45 }
 0x61c   : > { %v3496_v49 = vpop.eup %3495  ;;  %2553 = vst [vmem:[%s4530_s19 + $0x68] sm:$0xff] %v3494_v48 }
 0x61d   : > { %v3498_v50 = vpop.eup %3497  ;;  %2554 = vst [vmem:[%s4530_s19 + $0x70] sm:$0xff] %v3496_v49  ;;  %v2367_v51 = vpop.f32.mrb[84].mxu0 }
 0x61e   : > { %2555 = vst [vmem:[%s4530_s19 + $0x78] sm:$0xff] %v3498_v50  ;;  %v2368_v63 = vadd.f32 %v2367_v51, %v4517_v47  ;;  %v2369_v52 = vpop.f32.mrb[85].mxu0 }
 0x61f   : > { %v2370_v58 = vadd.f32 %v2369_v52, %v4519_v57  ;;  %v2371_v53 = vpop.f32.mrb[86].mxu0 }
 0x620   : > { %3507 = vtanh.f32 %v2368_v63  ;;  %v2372_v24 = vadd.f32 %v2371_v53, %v4517_v47  ;;  %v2373_v8 = vpop.f32.mrb[87].mxu0 }
 0x621   : > { %3509 = vtanh.f32 %v2370_v58  ;;  %v2374_v31 = vadd.f32 %v2373_v8, %v4519_v57 }
 0x622   : > { %v3500_v54 = vpop.eup %3499  ;;  %3511 = vtanh.f32 %v2372_v24 }
 0x623   : > { %v3502_v62 = vpop.eup %3501  ;;  %2556 = vst [vmem:[%s4530_s19 + $0x80] sm:$0xff] %v3500_v54  ;;  %3513 = vtanh.f32 %v2374_v31 }
 0x624   : > { %v3504_v59 = vpop.eup %3503  ;;  %2557 = vst [vmem:[%s4530_s19 + $0x88] sm:$0xff] %v3502_v62 }
 0x625   : > { %v3506_v60 = vpop.eup %3505  ;;  %2558 = vst [vmem:[%s4530_s19 + $0x90] sm:$0xff] %v3504_v59  ;;  %v2377_v61 = vpop.f32.mrb[88].mxu0 }
 0x626   : > { %2559 = vst [vmem:[%s4530_s19 + $0x98] sm:$0xff] %v3506_v60  ;;  %v2378_v9 = vadd.f32 %v2377_v61, %v4517_v47  ;;  %v2379_v0 = vpop.f32.mrb[89].mxu0 }
 0x627   : > { %v2380_v1 = vadd.f32 %v2379_v0, %v4519_v57  ;;  %v2381_v2 = vpop.f32.mrb[90].mxu0 }
 0x628   : > { %3515 = vtanh.f32 %v2378_v9  ;;  %v2382_v44 = vadd.f32 %v2381_v2, %v4517_v47  ;;  %v2383_v56 = vpop.f32.mrb[91].mxu0 }
 0x629   : > { %3517 = vtanh.f32 %v2380_v1  ;;  %v2384_v3 = vadd.f32 %v2383_v56, %v4519_v57 }
 0x62a   : > { %v3508_v4 = vpop.eup %3507  ;;  %3519 = vtanh.f32 %v2382_v44 }
 0x62b   : > { %v3510_v5 = vpop.eup %3509  ;;  %2560 = vst [vmem:[%s4530_s19 + $0xa0] sm:$0xff] %v3508_v4  ;;  %3521 = vtanh.f32 %v2384_v3 }
 0x62c   : > { %v3512_v6 = vpop.eup %3511  ;;  %2561 = vst [vmem:[%s4530_s19 + $0xa8] sm:$0xff] %v3510_v5 }
 0x62d   : > { %v3514_v7 = vpop.eup %3513  ;;  %2562 = vst [vmem:[%s4530_s19 + $0xb0] sm:$0xff] %v3512_v6  ;;  %v2387_v10 = vpop.f32.mrb[92].mxu0 }
 0x62e   : > { %2563 = vst [vmem:[%s4530_s19 + $0xb8] sm:$0xff] %v3514_v7  ;;  %v2388_v11 = vadd.f32 %v2387_v10, %v4517_v47  ;;  %v2389_v12 = vpop.f32.mrb[93].mxu0 }
 0x62f   : > { %v2390_v13 = vadd.f32 %v2389_v12, %v4519_v57  ;;  %v2391_v14 = vpop.f32.mrb[94].mxu0 }
 0x630   : > { %3523 = vtanh.f32 %v2388_v11  ;;  %v2392_v15 = vadd.f32 %v2391_v14, %v4517_v47  ;;  %v2393_v16 = vpop.f32.mrb[95].mxu0 }
 0x631   : > { %3525 = vtanh.f32 %v2390_v13  ;;  %v2394_v17 = vadd.f32 %v2393_v16, %v4519_v57 }
 0x632   : > { %v3516_v18 = vpop.eup %3515  ;;  %3527 = vtanh.f32 %v2392_v15 }
 0x633   : > { %v3518_v19 = vpop.eup %3517  ;;  %2564 = vst [vmem:[%s4530_s19 + $0xc0] sm:$0xff] %v3516_v18  ;;  %3529 = vtanh.f32 %v2394_v17 }
 0x634   : > { %v3520_v20 = vpop.eup %3519  ;;  %2565 = vst [vmem:[%s4530_s19 + $0xc8] sm:$0xff] %v3518_v19 }
 0x635   : > { %v3522_v21 = vpop.eup %3521  ;;  %2566 = vst [vmem:[%s4530_s19 + $0xd0] sm:$0xff] %v3520_v20  ;;  %v2397_v22 = vpop.f32.mrb[96].mxu0 }
 0x636   : > { %2567 = vst [vmem:[%s4530_s19 + $0xd8] sm:$0xff] %v3522_v21  ;;  %v2398_v23 = vadd.f32 %v2397_v22, %v4517_v47  ;;  %v2399_v25 = vpop.f32.mrb[97].mxu0 }
 0x637   : > { %v2400_v26 = vadd.f32 %v2399_v25, %v4519_v57  ;;  %v2401_v27 = vpop.f32.mrb[98].mxu0 }
 0x638   : > { %3531 = vtanh.f32 %v2398_v23  ;;  %v2402_v28 = vadd.f32 %v2401_v27, %v4517_v47  ;;  %v2403_v29 = vpop.f32.mrb[99].mxu0 }
 0x639   : > { %3533 = vtanh.f32 %v2400_v26  ;;  %v2404_v30 = vadd.f32 %v2403_v29, %v4519_v57 }
 0x63a   : > { %v3524_v32 = vpop.eup %3523  ;;  %3535 = vtanh.f32 %v2402_v28 }
 0x63b   : > { %v3526_v33 = vpop.eup %3525  ;;  %2568 = vst [vmem:[%s4530_s19 + $0xe0] sm:$0xff] %v3524_v32  ;;  %3537 = vtanh.f32 %v2404_v30 }
 0x63c   : > { %v3528_v34 = vpop.eup %3527  ;;  %2569 = vst [vmem:[%s4530_s19 + $0xe8] sm:$0xff] %v3526_v33 }
 0x63d   : > { %v3530_v35 = vpop.eup %3529  ;;  %2570 = vst [vmem:[%s4530_s19 + $0xf0] sm:$0xff] %v3528_v34  ;;  %v2407_v36 = vpop.f32.mrb[100].mxu0 }
 0x63e   : > { %2571 = vst [vmem:[%s4530_s19 + $0xf8] sm:$0xff] %v3530_v35  ;;  %v2408_v37 = vadd.f32 %v2407_v36, %v4517_v47  ;;  %v2409_v38 = vpop.f32.mrb[101].mxu0 }
 0x63f   : > { %v2410_v39 = vadd.f32 %v2409_v38, %v4519_v57  ;;  %v2411_v40 = vpop.f32.mrb[102].mxu0 }
 0x640   : > { %3539 = vtanh.f32 %v2408_v37  ;;  %v2412_v41 = vadd.f32 %v2411_v40, %v4517_v47  ;;  %v2413_v55 = vpop.f32.mrb[103].mxu0 }
 0x641   : > { %3541 = vtanh.f32 %v2410_v39  ;;  %v2414_v42 = vadd.f32 %v2413_v55, %v4519_v57 }
 0x642   : > { %v3532_v43 = vpop.eup %3531  ;;  %3543 = vtanh.f32 %v2412_v41 }
 0x643   : > { %v3534_v45 = vpop.eup %3533  ;;  %2572 = vst [vmem:[%s4530_s19 + $0x100] sm:$0xff] %v3532_v43  ;;  %3545 = vtanh.f32 %v2414_v42 }
 0x644   : > { %v3536_v46 = vpop.eup %3535  ;;  %2573 = vst [vmem:[%s4530_s19 + $0x108] sm:$0xff] %v3534_v45 }
 0x645   : > { %v3538_v48 = vpop.eup %3537  ;;  %2574 = vst [vmem:[%s4530_s19 + $0x110] sm:$0xff] %v3536_v46  ;;  %v2417_v49 = vpop.f32.mrb[104].mxu0 }
 0x646   : > { %2575 = vst [vmem:[%s4530_s19 + $0x118] sm:$0xff] %v3538_v48  ;;  %v2418_v50 = vadd.f32 %v2417_v49, %v4517_v47  ;;  %v2419_v51 = vpop.f32.mrb[105].mxu0 }
 0x647   : > { %v2420_v63 = vadd.f32 %v2419_v51, %v4519_v57  ;;  %v2421_v52 = vpop.f32.mrb[106].mxu0 }
 0x648   : > { %3547 = vtanh.f32 %v2418_v50  ;;  %v2422_v58 = vadd.f32 %v2421_v52, %v4517_v47  ;;  %v2423_v53 = vpop.f32.mrb[107].mxu0 }
 0x649   : > { %3549 = vtanh.f32 %v2420_v63  ;;  %v2424_v24 = vadd.f32 %v2423_v53, %v4519_v57 }
 0x64a   : > { %v3540_v8 = vpop.eup %3539  ;;  %3551 = vtanh.f32 %v2422_v58 }
 0x64b   : > { %v3542_v31 = vpop.eup %3541  ;;  %2576 = vst [vmem:[%s4530_s19 + $0x120] sm:$0xff] %v3540_v8  ;;  %3553 = vtanh.f32 %v2424_v24 }
 0x64c   : > { %v3544_v54 = vpop.eup %3543  ;;  %2577 = vst [vmem:[%s4530_s19 + $0x128] sm:$0xff] %v3542_v31 }
 0x64d   : > { %v3546_v62 = vpop.eup %3545  ;;  %2578 = vst [vmem:[%s4530_s19 + $0x130] sm:$0xff] %v3544_v54  ;;  %v2427_v59 = vpop.f32.mrb[108].mxu0 }
 0x64e   : > { %2579 = vst [vmem:[%s4530_s19 + $0x138] sm:$0xff] %v3546_v62  ;;  %v2428_v60 = vadd.f32 %v2427_v59, %v4517_v47  ;;  %v2429_v61 = vpop.f32.mrb[109].mxu0 }
 0x64f   : > { %v2430_v9 = vadd.f32 %v2429_v61, %v4519_v57  ;;  %v2431_v0 = vpop.f32.mrb[110].mxu0 }
 0x650   : > { %3555 = vtanh.f32 %v2428_v60  ;;  %v2432_v1 = vadd.f32 %v2431_v0, %v4517_v47  ;;  %v2433_v2 = vpop.f32.mrb[111].mxu0 }
 0x651   : > { %3557 = vtanh.f32 %v2430_v9  ;;  %v2434_v44 = vadd.f32 %v2433_v2, %v4519_v57 }
 0x652   : > { %v3548_v56 = vpop.eup %3547  ;;  %3559 = vtanh.f32 %v2432_v1 }
 0x653   : > { %v3550_v3 = vpop.eup %3549  ;;  %2580 = vst [vmem:[%s4530_s19 + $0x140] sm:$0xff] %v3548_v56  ;;  %3561 = vtanh.f32 %v2434_v44 }
 0x654   : > { %v3552_v4 = vpop.eup %3551  ;;  %2581 = vst [vmem:[%s4530_s19 + $0x148] sm:$0xff] %v3550_v3 }
 0x655   : > { %v3554_v5 = vpop.eup %3553  ;;  %2582 = vst [vmem:[%s4530_s19 + $0x150] sm:$0xff] %v3552_v4  ;;  %v2437_v6 = vpop.f32.mrb[112].mxu0 }
 0x656   : > { %2583 = vst [vmem:[%s4530_s19 + $0x158] sm:$0xff] %v3554_v5  ;;  %v2438_v7 = vadd.f32 %v2437_v6, %v4517_v47  ;;  %v2439_v10 = vpop.f32.mrb[113].mxu0 }
 0x657   : > { %v2440_v11 = vadd.f32 %v2439_v10, %v4519_v57  ;;  %v2441_v12 = vpop.f32.mrb[114].mxu0 }
 0x658   : > { %3563 = vtanh.f32 %v2438_v7  ;;  %v2442_v13 = vadd.f32 %v2441_v12, %v4517_v47  ;;  %v2443_v14 = vpop.f32.mrb[115].mxu0 }
 0x659   : > { %3565 = vtanh.f32 %v2440_v11  ;;  %v2444_v15 = vadd.f32 %v2443_v14, %v4519_v57 }
 0x65a   : > { %v3556_v16 = vpop.eup %3555  ;;  %3567 = vtanh.f32 %v2442_v13 }
 0x65b   : > { %v3558_v17 = vpop.eup %3557  ;;  %2584 = vst [vmem:[%s4530_s19 + $0x160] sm:$0xff] %v3556_v16  ;;  %3569 = vtanh.f32 %v2444_v15 }
 0x65c   : > { %v3560_v18 = vpop.eup %3559  ;;  %2585 = vst [vmem:[%s4530_s19 + $0x168] sm:$0xff] %v3558_v17 }
 0x65d   : > { %v3562_v19 = vpop.eup %3561  ;;  %2586 = vst [vmem:[%s4530_s19 + $0x170] sm:$0xff] %v3560_v18  ;;  %v2447_v20 = vpop.f32.mrb[116].mxu0 }
 0x65e   : > { %2587 = vst [vmem:[%s4530_s19 + $0x178] sm:$0xff] %v3562_v19  ;;  %v2448_v21 = vadd.f32 %v2447_v20, %v4517_v47  ;;  %v2449_v22 = vpop.f32.mrb[117].mxu0 }
 0x65f   : > { %v2450_v23 = vadd.f32 %v2449_v22, %v4519_v57  ;;  %v2451_v25 = vpop.f32.mrb[118].mxu0 }
 0x660   : > { %3571 = vtanh.f32 %v2448_v21  ;;  %v2452_v26 = vadd.f32 %v2451_v25, %v4517_v47  ;;  %v2453_v27 = vpop.f32.mrb[119].mxu0 }
 0x661   : > { %3573 = vtanh.f32 %v2450_v23  ;;  %v2454_v28 = vadd.f32 %v2453_v27, %v4519_v57 }
 0x662   : > { %v3564_v29 = vpop.eup %3563  ;;  %3575 = vtanh.f32 %v2452_v26 }
 0x663   : > { %v3566_v30 = vpop.eup %3565  ;;  %2588 = vst [vmem:[%s4530_s19 + $0x180] sm:$0xff] %v3564_v29  ;;  %3577 = vtanh.f32 %v2454_v28 }
 0x664   : > { %v3568_v32 = vpop.eup %3567  ;;  %2589 = vst [vmem:[%s4530_s19 + $0x188] sm:$0xff] %v3566_v30 }
 0x665   : > { %v3570_v33 = vpop.eup %3569  ;;  %2590 = vst [vmem:[%s4530_s19 + $0x190] sm:$0xff] %v3568_v32  ;;  %v2457_v34 = vpop.f32.mrb[120].mxu0 }
 0x666   : > { %2591 = vst [vmem:[%s4530_s19 + $0x198] sm:$0xff] %v3570_v33  ;;  %v2458_v35 = vadd.f32 %v2457_v34, %v4517_v47  ;;  %v2459_v36 = vpop.f32.mrb[121].mxu0 }
 0x667   : > { %v2460_v37 = vadd.f32 %v2459_v36, %v4519_v57  ;;  %v2461_v38 = vpop.f32.mrb[122].mxu0 }
 0x668   : > { %3579 = vtanh.f32 %v2458_v35  ;;  %v2462_v39 = vadd.f32 %v2461_v38, %v4517_v47  ;;  %v2463_v40 = vpop.f32.mrb[123].mxu0 }
 0x669   : > { %3581 = vtanh.f32 %v2460_v37  ;;  %v2464_v41 = vadd.f32 %v2463_v40, %v4519_v57 }
 0x66a   : > { %v3572_v55 = vpop.eup %3571  ;;  %3583 = vtanh.f32 %v2462_v39 }
 0x66b   : > { %v3574_v42 = vpop.eup %3573  ;;  %2592 = vst [vmem:[%s4530_s19 + $0x1a0] sm:$0xff] %v3572_v55  ;;  %3585 = vtanh.f32 %v2464_v41 }
 0x66c   : > { %v3576_v43 = vpop.eup %3575  ;;  %2593 = vst [vmem:[%s4530_s19 + $0x1a8] sm:$0xff] %v3574_v42 }
 0x66d   : > { %v3578_v45 = vpop.eup %3577  ;;  %2594 = vst [vmem:[%s4530_s19 + $0x1b0] sm:$0xff] %v3576_v43  ;;  %v2467_v46 = vpop.f32.mrb[124].mxu0 }
 0x66e   : > { %2595 = vst [vmem:[%s4530_s19 + $0x1b8] sm:$0xff] %v3578_v45  ;;  %v2468_v48 = vadd.f32 %v2467_v46, %v4517_v47  ;;  %v2469_v49 = vpop.f32.mrb[125].mxu0 }
 0x66f   : > { %v2470_v50 = vadd.f32 %v2469_v49, %v4519_v57  ;;  %v2471_v51 = vpop.f32.mrb[126].mxu0 }
 0x670   : > { %3587 = vtanh.f32 %v2468_v48  ;;  %v2472_v63 = vadd.f32 %v2471_v51, %v4517_v47  ;;  %v2473_v52 = vpop.f32.mrb[127].mxu0 }
 0x671   : > { %3589 = vtanh.f32 %v2470_v50  ;;  %v2474_v58 = vadd.f32 %v2473_v52, %v4519_v57 }
 0x672   : > { %v3580_v53 = vpop.eup %3579  ;;  %3591 = vtanh.f32 %v2472_v63 }
 0x673   : > { %v3582_v24 = vpop.eup %3581  ;;  %2596 = vst [vmem:[%s4530_s19 + $0x1c0] sm:$0xff] %v3580_v53  ;;  %3593 = vtanh.f32 %v2474_v58 }
 0x674   : > { %v3584_v8 = vpop.eup %3583  ;;  %2597 = vst [vmem:[%s4530_s19 + $0x1c8] sm:$0xff] %v3582_v24 }
 0x675   : > { %v3586_v31 = vpop.eup %3585  ;;  %2598 = vst [vmem:[%s4530_s19 + $0x1d0] sm:$0xff] %v3584_v8 }
 0x676   : > { %2599 = vst [vmem:[%s4530_s19 + $0x1d8] sm:$0xff] %v3586_v31 }
 0x67a   : > { %v3588_v47 = vpop.eup %3587 }
 0x67b   : > { %v3590_v54 = vpop.eup %3589  ;;  %2600 = vst [vmem:[%s4530_s19 + $0x1e0] sm:$0xff] %v3588_v47 }
 0x67c   : > { %v3592_v57 = vpop.eup %3591  ;;  %2601 = vst [vmem:[%s4530_s19 + $0x1e8] sm:$0xff] %v3590_v54 }
 0x67d   : > { %v3594_v62 = vpop.eup %3593  ;;  %2602 = vst [vmem:[%s4530_s19 + $0x1f0] sm:$0xff] %v3592_v57 }
 0x67e   : > { %2603 = vst [vmem:[%s4530_s19 + $0x1f8] sm:$0xff] %v3594_v62 }
 0x67f   : > { %3750 = shalt.err (!%p3747_p13)
}
 0x680   : > { %s3751_s24 = scalar_lea.hbm %s4654_s17, 8192  ;;  %s3755_s25 = scalar_lea.hbm %s4748_s13, 16384 }
 0x681   : > { %p3752_p0 = scmp.ne.s32.totalorder %s4654_s17, %s3751_s24  ;;  %p3756_p9 = scmp.lt.u32.totalorder %s4654_s17, %s4748_s13 }
 0x682   : > { %p3757_p12 = scmp.lt.u32.totalorder %s3755_s25, %s3751_s24  ;;  %p3759_p1 = scmp.lt.u32.totalorder %s3751_s24, %s4654_s17 }
 0x683   : > { %p3753_p5 = pnand %p3752_p0, %p4054_p4 }
 0x684   : > { %p3758_p2 = por %p3757_p12, %p3756_p9 }
 0x685   : > { %p3754_p11 = pneg %p3753_p5 }
 0x686   : > { %p3760_p6 = por %p3759_p1, %p3758_p2 }
 0x688   : > { %p3761_p8 = pnand %p3760_p6, %p3754_p11 }
 0x68a   : > { %3764 = shalt.err (!%p3761_p8)
}
 0x68b   : > { %s3824_s30 = smov 256   ;;  %s3825_s15 = smov 16  }
 0x68c   : > { %3285 = dma.vmem_to_hbm [thread:$0]  (%p4054_p4), %s4656_s23, 8192, %s4654_s17, %s2605_s29, %s3824_s30, %s3824_s30, %s3825_s15  }
 0x68d PF: > { %s4749_s20 = sld [smem:[#allocation16_spill]]  ;;  %s4750_s10 = sld [smem:[#allocation17_spill]] }
 0x68e   : > { %p4752_p7 = scmp.ge.s32.totalorder %s3811_s28, 2 }
 0x693   : > { %s2634_s16 = sand.u32 1, %s4749_s20   ;;  %p4751_p3 = scmp.ne.s32.totalorder %s4750_s10, 0 }
 0x694   : > { %s2635_s24 = scalar_lea.sflag [#allocation4], %s2634_s16 }
 0x695   : > { %p3305_p10 = pnand %p4752_p7, %p4751_p3 }
 0x697   : > { %3794 = dma.done.wait (!%p3305_p10), %s2635_s24, 8192  }
 0x698   : > { %3796 = vsyncadd (!%p3305_p10), %s2635_s24, 4294959104  ;;  %p28_p13 = scmp.ge.s32.totalorder %s4041_s2, 4   ;;  %s4753_s25 = smov %s3803_s26 }
 0x699   : > { %s4754_s26 = smov %s3807_s27  ;;  %s4755_s27 = smov %s4050_s22 }
 0x69a   : > { %s4756_s28 = smov %s4041_s2  ;;  %30 = sbr.rel (!%p28_p13) target bundleno = 12 (0xc), region = 133 }
 0x6a1   :  { %2640 = vsyncpa [#allocation3], 1 }
 0x6a2   :  { %2642 = vsyncpa [#allocation3 + $0x1], 1 }
 0x6a3   :  { %2643 = vsyncpa [#allocation6], 1 }
 0x6a4   :  { %2644 = vsyncpa [#allocation9], 1 }
 0x6a5   :  { %2645 = vsyncpa [#allocation4], 1 }
 0x6a6   :  { %2647 = vsyncpa [#allocation4 + $0x1], 1 }

</bundles_post_ra>
